<compile_context>
chip_gen: v6e
topology: v6e:2x2x1
jax: 0.10.0
libtpu: 0.0.40
codegen_flags: <defaults>
</compile_context>

<pallas_src>
import functools

import jax
import jax.numpy as jnp
import numpy as np
from jax import lax
from jax.experimental import pallas as pl
from jax.experimental.pallas import tpu as pltpu


# Safe on v7x (64 MiB physical VMEM); can be raised toward 128 MiB on v5e/v6e.
VMEM_LIMIT_BYTES = 64 * 1024 * 1024

MASK_VALUE = -1e30


# -----------------------------------------------------------------------------
# helpers
# -----------------------------------------------------------------------------
def _layer_norm(h, g, b, eps=1e-5):
    # LayerNorm statistics stay in f32 (v5e VPU/EUP have no bf16).
    mu = jnp.mean(h, axis=-1, keepdims=True)
    var = jnp.mean((h - mu) ** 2, axis=-1, keepdims=True)
    return (h - mu) * lax.rsqrt(var + eps) * g + b


def _gelu_tanh(h):
    # GPT-2 GELU (tanh approximation) in f32.
    return 0.5 * h * (1.0 + jnp.tanh(0.7978845608028654 *
                                     (h + 0.044715 * h * h * h)))


def _const_spec(shape, single_buffer):
    """BlockSpec for a weight/bias: whole array, constant index_map."""
    idx = lambda *_: (0,) * len(shape)
    if single_buffer:
        # Constant index_map => never re-fetched; single buffer halves its
        # VMEM residency (matters for real GPT-2 weights on v7x).
        return pl.BlockSpec(shape, idx, pipeline_mode=pl.Buffered(1))
    return pl.BlockSpec(shape, idx)


# -----------------------------------------------------------------------------
# Kernel 1: LayerNorm 1 + QKV projection (row-tiled)
# -----------------------------------------------------------------------------
def ln_qkv_kernel(x_ref, g_ref, b_ref,
                  wq_ref, wk_ref, wv_ref, bq_ref, bk_ref, bv_ref,
                  q_ref, k_ref, v_ref):
    x = x_ref[0].astype(jnp.float32)                       # (tr, C)
    xn = _layer_norm(x, g_ref[0], b_ref[0])
    xnc = xn.astype(wq_ref.dtype)                          # bf16 for the MXU

    q = jnp.dot(xnc, wq_ref[...], preferred_element_type=jnp.float32) + bq_ref[0]
    k = jnp.dot(xnc, wk_ref[...], preferred_element_type=jnp.float32) + bk_ref[0]
    v = jnp.dot(xnc, wv_ref[...], preferred_element_type=jnp.float32) + bv_ref[0]

    q_ref[0] = q.astype(q_ref.dtype)
    k_ref[0] = k.astype(k_ref.dtype)
    v_ref[0] = v.astype(v_ref.dtype)


def _ln_qkv(x, ln1_g, ln1_b, w_q, w_k, w_v, b_q, b_k, b_v,
            *, tr, compute_dtype, single_buffer):
    B, T, C = x.shape
    act = lambda: pl.BlockSpec((1, tr, C), lambda b, r: (b, r, 0))
    ws = lambda a: _const_spec(a.shape, single_buffer)
    out_sd = jax.ShapeDtypeStruct((B, T, C), compute_dtype)
    return pl.pallas_call(
        ln_qkv_kernel,
        grid=(B, T // tr),
        in_specs=[act(), ws(ln1_g), ws(ln1_b),
                  ws(w_q), ws(w_k), ws(w_v), ws(b_q), ws(b_k), ws(b_v)],
        out_specs=[act(), act(), act()],
        out_shape=(out_sd, out_sd, out_sd),
        compiler_params=pltpu.CompilerParams(
            dimension_semantics=("parallel", "parallel"),
            vmem_limit_bytes=VMEM_LIMIT_BYTES),
    )(x, ln1_g, ln1_b, w_q, w_k, w_v, b_q, b_k, b_v)


# -----------------------------------------------------------------------------
# Kernel 2: causal flash attention (online softmax over K/V tiles)
# -----------------------------------------------------------------------------
def flash_attn_kernel(q_ref, k_ref, v_ref, o_ref, m_sc, l_sc, acc_sc, *, n_head):
    _, tq, C = q_ref.shape
    tk = k_ref.shape[1]
    hd = C // n_head
    qi = pl.program_id(1)
    kv = pl.program_id(2)

    @pl.when(kv == 0)
    def _init():
        m_sc[...] = jnp.full_like(m_sc, MASK_VALUE)
        l_sc[...] = jnp.zeros_like(l_sc)
        acc_sc[...] = jnp.zeros_like(acc_sc)

    # Skip K/V tiles that lie entirely in the (masked) future of this Q tile.
    @pl.when(kv * tk <= qi * tq + (tq - 1))
    def _compute():
        q = q_ref[0].reshape(tq, n_head, hd)               # bf16, Q pre-scaled
        k = k_ref[0].reshape(tk, n_head, hd)
        v = v_ref[0].reshape(tk, n_head, hd)

        # scores in f32 (bf16 operands, f32 accumulation)
        s = jnp.einsum('qhd,khd->hqk', q, k,
                       preferred_element_type=jnp.float32)  # (H, tq, tk)

        row = qi * tq + lax.broadcasted_iota(jnp.int32, (tq, tk), 0)
        col = kv * tk + lax.broadcasted_iota(jnp.int32, (tq, tk), 1)
        s = jnp.where((col <= row)[None, :, :], s, MASK_VALUE)

        m_prev = m_sc[...]                                  # (H, tq, 1)
        m_new = jnp.maximum(m_prev, s.max(axis=-1, keepdims=True))
        alpha = jnp.exp(m_prev - m_new)
        p = jnp.exp(s - m_new)                              # f32

        l_sc[...] = alpha * l_sc[...] + p.sum(axis=-1, keepdims=True)
        acc_sc[...] = alpha * acc_sc[...] + jnp.einsum(
            'hqk,khd->hqd', p.astype(v.dtype), v,
            preferred_element_type=jnp.float32)             # (H, tq, hd)
        m_sc[...] = m_new

    @pl.when(kv == pl.num_programs(2) - 1)
    def _finalize():
        out = acc_sc[...] * pl.reciprocal(l_sc[...], approx=True)
        o_ref[0] = jnp.transpose(out, (1, 0, 2)).reshape(tq, C).astype(o_ref.dtype)


def _flash_attention(q, k, v, *, n_head, tq, tk):
    B, T, C = q.shape
    hd = C // n_head
    q_spec = pl.BlockSpec((1, tq, C), lambda b, qi, kv: (b, qi, 0))
    kv_spec = pl.BlockSpec((1, tk, C), lambda b, qi, kv: (b, kv, 0))
    o_spec = pl.BlockSpec((1, tq, C), lambda b, qi, kv: (b, qi, 0))
    return pl.pallas_call(
        functools.partial(flash_attn_kernel, n_head=n_head),
        grid=(B, T // tq, T // tk),
        in_specs=[q_spec, kv_spec, kv_spec],
        out_specs=o_spec,
        out_shape=jax.ShapeDtypeStruct((B, T, C), q.dtype),
        scratch_shapes=[
            pltpu.VMEM((n_head, tq, 1), jnp.float32),   # running max
            pltpu.VMEM((n_head, tq, 1), jnp.float32),   # running sum
            pltpu.VMEM((n_head, tq, hd), jnp.float32),  # accumulator
        ],
        compiler_params=pltpu.CompilerParams(
            dimension_semantics=("parallel", "parallel", "arbitrary"),
            vmem_limit_bytes=VMEM_LIMIT_BYTES),
    )(q, k, v)


# -----------------------------------------------------------------------------
# Kernel 3: attention out-proj + residual, LayerNorm 2, chunked MLP + residual
# -----------------------------------------------------------------------------
def resid_mlp_kernel(x_ref, a_ref, wo_ref, bo_ref, g2_ref, b2_ref,
                     wfc_ref, bfc_ref, wpr_ref, bpr_ref, o_ref, *, hidden_chunk):
    x = x_ref[0].astype(jnp.float32)                        # (tr, C)

    # attention output projection + residual
    a = jnp.dot(a_ref[0], wo_ref[...],
                preferred_element_type=jnp.float32) + bo_ref[0]
    x = x + a

    xn = _layer_norm(x, g2_ref[0], b2_ref[0]).astype(wfc_ref.dtype)

    # MLP with the 4C hidden dimension processed in chunks: never materializes
    # the full (tr, 4C) activation; partial products accumulate in f32.
    H4 = wfc_ref.shape[1]
    y = jnp.zeros_like(x)
    for c in range(0, H4, hidden_chunk):
        h = jnp.dot(xn, wfc_ref[:, c:c + hidden_chunk],
                    preferred_element_type=jnp.float32) + bfc_ref[:, c:c + hidden_chunk]
        h = _gelu_tanh(h)
        y = y + jnp.dot(h.astype(wpr_ref.dtype), wpr_ref[c:c + hidden_chunk, :],
                        preferred_element_type=jnp.float32)

    o_ref[0] = (x + y + bpr_ref[0]).astype(o_ref.dtype)


def _resid_mlp(x, attn, w_ao, b_ao, ln2_g, ln2_b, w_fc, b_fc, w_pr, b_pr,
               *, tr, hidden_chunk, single_buffer):
    B, T, C = x.shape
    act = lambda: pl.BlockSpec((1, tr, C), lambda b, r: (b, r, 0))
    ws = lambda a: _const_spec(a.shape, single_buffer)
    return pl.pallas_call(
        functools.partial(resid_mlp_kernel, hidden_chunk=hidden_chunk),
        grid=(B, T // tr),
        in_specs=[act(), act(), ws(w_ao), ws(b_ao), ws(ln2_g), ws(ln2_b),
                  ws(w_fc), ws(b_fc), ws(w_pr), ws(b_pr)],
        out_specs=act(),
        out_shape=jax.ShapeDtypeStruct((B, T, C), x.dtype),
        compiler_params=pltpu.CompilerParams(
            dimension_semantics=("parallel", "parallel"),
            vmem_limit_bytes=VMEM_LIMIT_BYTES),
    )(x, attn, w_ao, b_ao, ln2_g, ln2_b, w_fc, b_fc, w_pr, b_pr)


# -----------------------------------------------------------------------------
# Full block wrapper
# -----------------------------------------------------------------------------
def _gpt2_block_impl(x, params, n_head, *, tq, tk, tr, hidden_chunk,
                     compute_dtype, single_buffer_weights):
    B, T, C = x.shape
    (ln1_g, ln1_b, w_qkv, b_qkv, w_ao, b_ao,
     ln2_g, ln2_b, w_fc, b_fc, w_pr, b_pr) = params

    assert C % n_head == 0
    assert T % tq == 0 and T % tk == 0 and T % tr == 0
    assert (4 * C) % hidden_chunk == 0
    hd = C // n_head
    scale = 1.0 / float(np.sqrt(hd))

    # Split QKV weights; fold the 1/sqrt(hd) attention scale into the Q
    # projection (no per-step VPU pass); bf16 weights for the MXU, f32 biases.
    w_q = (w_qkv[:, :C] * scale).astype(compute_dtype)
    w_k = w_qkv[:, C:2 * C].astype(compute_dtype)
    w_v = w_qkv[:, 2 * C:].astype(compute_dtype)
    b_q = b_qkv[:, :C] * scale
    b_k = b_qkv[:, C:2 * C]
    b_v = b_qkv[:, 2 * C:]
    w_ao_c = w_ao.astype(compute_dtype)
    w_fc_c = w_fc.astype(compute_dtype)
    w_pr_c = w_pr.astype(compute_dtype)

    q, k, v = _ln_qkv(x, ln1_g, ln1_b, w_q, w_k, w_v, b_q, b_k, b_v,
                      tr=tr, compute_dtype=compute_dtype,
                      single_buffer=single_buffer_weights)
    attn = _flash_attention(q, k, v, n_head=n_head, tq=tq, tk=tk)
    return _resid_mlp(x, attn, w_ao_c, b_ao, ln2_g, ln2_b,
                      w_fc_c, b_fc, w_pr_c, b_pr,
                      tr=tr, hidden_chunk=hidden_chunk,
                      single_buffer=single_buffer_weights)


def gpt2_block(x, params, n_head, *, tq=32, tk=32, tr=32, hidden_chunk=128,
               compute_dtype=jnp.bfloat16):
    kwargs = dict(tq=tq, tk=tk, tr=tr, hidden_chunk=hidden_chunk,
                  compute_dtype=compute_dtype)
    try:
        return _gpt2_block_impl(x, params, n_head,
                                single_buffer_weights=True, **kwargs)
    except Exception:
        # pipeline_mode=pl.Buffered(1) unsupported on this jax/libtpu combo:
        # fall back to default (double-buffered) weight BlockSpecs.
        return _gpt2_block_impl(x, params, n_head,
                                single_buffer_weights=False, **kwargs)


# -----------------------------------------------------------------------------
# Pure-JAX f32 reference (same math) for a correctness check.
# -----------------------------------------------------------------------------
def gpt2_block_ref(x, params, n_head):
    (ln1_g, ln1_b, w_qkv, b_qkv, w_ao, b_ao,
     ln2_g, ln2_b, w_fc, b_fc, w_pr, b_pr) = params
    B, T, C = x.shape
    hd = C // n_head

    def ln(h, g, b, eps=1e-5):
        mu = jnp.mean(h, -1, keepdims=True)
        var = jnp.mean((h - mu) ** 2, -1, keepdims=True)
        return (h - mu) / jnp.sqrt(var + eps) * g[0] + b[0]

    xn = ln(x, ln1_g, ln1_b)
    qkv = xn @ w_qkv + b_qkv[0]
    q, k, v = jnp.split(qkv, 3, axis=-1)
    q = q.reshape(B, T, n_head, hd)
    k = k.reshape(B, T, n_head, hd)
    v = v.reshape(B, T, n_head, hd)
    s = jnp.einsum('bqhd,bkhd->bhqk', q, k) / jnp.sqrt(jnp.float32(hd))
    mask = jnp.tril(jnp.ones((T, T), bool))
    s = jnp.where(mask[None, None], s, MASK_VALUE)
    p = jax.nn.softmax(s, axis=-1)
    a = jnp.einsum('bhqk,bkhd->bqhd', p, v).reshape(B, T, C)
    x = x + (a @ w_ao + b_ao[0])

    xn2 = ln(x, ln2_g, ln2_b)
    h = xn2 @ w_fc + b_fc[0]
    h = 0.5 * h * (1.0 + jnp.tanh(0.7978845608028654 * (h + 0.044715 * h ** 3)))
    return x + (h @ w_pr + b_pr[0])


# -----------------------------------------------------------------------------
# Deterministic parameter init (shapes from Block.__init__ for GPT-2)
# -----------------------------------------------------------------------------
def init_params(key, n_embd):
    C = n_embd
    ks = jax.random.split(key, 4)
    std = 0.02
    ln1_g = jnp.ones((1, C), jnp.float32)
    ln1_b = jnp.zeros((1, C), jnp.float32)
    w_qkv = std * jax.random.normal(ks[0], (C, 3 * C), jnp.float32)
    b_qkv = jnp.zeros((1, 3 * C), jnp.float32)
    w_ao = std * jax.random.normal(ks[1], (C, C), jnp.float32)
    b_ao = jnp.zeros((1, C), jnp.float32)
    ln2_g = jnp.ones((1, C), jnp.float32)
    ln2_b = jnp.zeros((1, C), jnp.float32)
    w_fc = std * jax.random.normal(ks[2], (C, 4 * C), jnp.float32)
    b_fc = jnp.zeros((1, 4 * C), jnp.float32)
    w_pr = std * jax.random.normal(ks[3], (4 * C, C), jnp.float32)
    b_pr = jnp.zeros((1, C), jnp.float32)
    return (ln1_g, ln1_b, w_qkv, b_qkv, w_ao, b_ao,
            ln2_g, ln2_b, w_fc, b_fc, w_pr, b_pr)


if __name__ == "__main__":
    # Small but tiling-exercising shapes: 2 q-tiles x 2 kv-tiles, 2 MLP chunks.
    B, T, C, n_head = 2, 64, 64, 4
    key = jax.random.PRNGKey(0)
    kx, kp = jax.random.split(key)
    x = jax.random.normal(kx, (B, T, C), jnp.float32)
    params = init_params(kp, C)

    out = gpt2_block(x, params, n_head, tq=32, tk=32, tr=32, hidden_chunk=128)
    out = jax.block_until_ready(out)

    ref = jax.block_until_ready(gpt2_block_ref(x, params, n_head))
    # bf16 matmul operands (f32 accumulation) -> relaxed tolerance vs f32 ref.
    np.testing.assert_allclose(np.asarray(out), np.asarray(ref),
                               rtol=2e-2, atol=2e-2)
    print("KERNEL_OK")
</pallas_src>

<mosaic_0001>
module attributes {stable_mosaic.version = 11 : i64} {
  func.func @ln_qkv_kernel(%arg0: i32, %arg1: i32, %arg2: memref<1x32x64xf32, #tpu.memory_space<vmem>>, %arg3: memref<1x64xf32, #tpu.memory_space<vmem>>, %arg4: memref<1x64xf32, #tpu.memory_space<vmem>>, %arg5: memref<64x64xbf16, #tpu.memory_space<vmem>>, %arg6: memref<64x64xbf16, #tpu.memory_space<vmem>>, %arg7: memref<64x64xbf16, #tpu.memory_space<vmem>>, %arg8: memref<1x64xf32, #tpu.memory_space<vmem>>, %arg9: memref<1x64xf32, #tpu.memory_space<vmem>>, %arg10: memref<1x64xf32, #tpu.memory_space<vmem>>, %arg11: memref<1x32x64xbf16, #tpu.memory_space<vmem>>, %arg12: memref<1x32x64xbf16, #tpu.memory_space<vmem>>, %arg13: memref<1x32x64xbf16, #tpu.memory_space<vmem>>) attributes {dimension_semantics = [#tpu.dimension_semantics<parallel>, #tpu.dimension_semantics<parallel>], iteration_bounds = array<i64: 2, 2>, scalar_prefetch = 0 : i64, scratch_operands = 0 : i64, tpu.core_type = #tpu.core_type<tc>, window_params = [{transform_indices = @transform_0, window_bounds = array<i64: 1, 32, 64>}, {pipeline_mode = #tpu.pipeline_mode<synchronous>, transform_indices = @transform_1, window_bounds = array<i64: 1, 64>}, {pipeline_mode = #tpu.pipeline_mode<synchronous>, transform_indices = @transform_2, window_bounds = array<i64: 1, 64>}, {pipeline_mode = #tpu.pipeline_mode<synchronous>, transform_indices = @transform_3, window_bounds = array<i64: 64, 64>}, {pipeline_mode = #tpu.pipeline_mode<synchronous>, transform_indices = @transform_4, window_bounds = array<i64: 64, 64>}, {pipeline_mode = #tpu.pipeline_mode<synchronous>, transform_indices = @transform_5, window_bounds = array<i64: 64, 64>}, {pipeline_mode = #tpu.pipeline_mode<synchronous>, transform_indices = @transform_6, window_bounds = array<i64: 1, 64>}, {pipeline_mode = #tpu.pipeline_mode<synchronous>, transform_indices = @transform_7, window_bounds = array<i64: 1, 64>}, {pipeline_mode = #tpu.pipeline_mode<synchronous>, transform_indices = @transform_8, window_bounds = array<i64: 1, 64>}, {transform_indices = @transform_9, window_bounds = array<i64: 1, 32, 64>}, {transform_indices = @transform_10, window_bounds = array<i64: 1, 32, 64>}, {transform_indices = @transform_11, window_bounds = array<i64: 1, 32, 64>}]} {
    %c0 = arith.constant 0 : index
    %c0_0 = arith.constant 0 : index
    %c0_1 = arith.constant 0 : index
    %0 = vector.load %arg2[%c0, %c0_0, %c0_1] : memref<1x32x64xf32, #tpu.memory_space<vmem>>, vector<1x32x64xf32>
    %1 = vector.shape_cast %0 : vector<1x32x64xf32> to vector<32x64xf32>
    %c0_2 = arith.constant 0 : index
    %c0_3 = arith.constant 0 : index
    %2 = vector.load %arg3[%c0_2, %c0_3] : memref<1x64xf32, #tpu.memory_space<vmem>>, vector<1x64xf32>
    %3 = vector.shape_cast %2 : vector<1x64xf32> to vector<64xf32>
    %c0_4 = arith.constant 0 : index
    %c0_5 = arith.constant 0 : index
    %4 = vector.load %arg4[%c0_4, %c0_5] : memref<1x64xf32, #tpu.memory_space<vmem>>, vector<1x64xf32>
    %5 = vector.shape_cast %4 : vector<1x64xf32> to vector<64xf32>
    %cst = arith.constant dense<0.000000e+00> : vector<32xf32>
    %6 = vector.multi_reduction <add>, %1, %cst [1] : vector<32x64xf32> to vector<32xf32>
    %7 = vector.shape_cast %6 : vector<32xf32> to vector<32x1xf32>
    %cst_6 = arith.constant 6.400000e+01 : f32
    %8 = vector.broadcast %cst_6 : f32 to vector<32x1xf32>
    %9 = arith.divf %7, %8 : vector<32x1xf32>
    %10 = vector.broadcast %9 : vector<32x1xf32> to vector<32x64xf32>
    %11 = arith.subf %1, %10 : vector<32x64xf32>
    %12 = arith.mulf %11, %11 : vector<32x64xf32>
    %cst_7 = arith.constant dense<0.000000e+00> : vector<32xf32>
    %13 = vector.multi_reduction <add>, %12, %cst_7 [1] : vector<32x64xf32> to vector<32xf32>
    %14 = vector.shape_cast %13 : vector<32xf32> to vector<32x1xf32>
    %cst_8 = arith.constant 6.400000e+01 : f32
    %15 = vector.broadcast %cst_8 : f32 to vector<32x1xf32>
    %16 = arith.divf %14, %15 : vector<32x1xf32>
    %17 = vector.broadcast %9 : vector<32x1xf32> to vector<32x64xf32>
    %18 = arith.subf %1, %17 : vector<32x64xf32>
    %cst_9 = arith.constant 9.99999974E-6 : f32
    %19 = vector.broadcast %cst_9 : f32 to vector<32x1xf32>
    %20 = arith.addf %16, %19 : vector<32x1xf32>
    %21 = math.rsqrt %20 : vector<32x1xf32>
    %22 = vector.broadcast %21 : vector<32x1xf32> to vector<32x64xf32>
    %23 = arith.mulf %18, %22 : vector<32x64xf32>
    %24 = vector.shape_cast %3 : vector<64xf32> to vector<1x64xf32>
    %25 = vector.broadcast %24 : vector<1x64xf32> to vector<32x64xf32>
    %26 = arith.mulf %23, %25 : vector<32x64xf32>
    %27 = vector.shape_cast %5 : vector<64xf32> to vector<1x64xf32>
    %28 = vector.broadcast %27 : vector<1x64xf32> to vector<32x64xf32>
    %29 = arith.addf %26, %28 : vector<32x64xf32>
    %30 = arith.truncf %29 : vector<32x64xf32> to vector<32x64xbf16>
    %c0_10 = arith.constant 0 : index
    %c0_11 = arith.constant 0 : index
    %31 = vector.load %arg5[%c0_10, %c0_11] : memref<64x64xbf16, #tpu.memory_space<vmem>>, vector<64x64xbf16>
    %cst_12 = arith.constant dense<0.000000e+00> : vector<32x64xf32>
    %32 = tpu.matmul %30, %31, %cst_12 {dimension_numbers = #tpu.dot_dimension_numbers<[1], [0], [0], [1], [0, 0, 1, 1], [], []>} : vector<32x64xbf16>, vector<64x64xbf16>, vector<32x64xf32> -> vector<32x64xf32>
    %c0_13 = arith.constant 0 : index
    %c0_14 = arith.constant 0 : index
    %33 = vector.load %arg8[%c0_13, %c0_14] : memref<1x64xf32, #tpu.memory_space<vmem>>, vector<1x64xf32>
    %34 = vector.shape_cast %33 : vector<1x64xf32> to vector<64xf32>
    %35 = vector.shape_cast %34 : vector<64xf32> to vector<1x64xf32>
    %36 = vector.broadcast %35 : vector<1x64xf32> to vector<32x64xf32>
    %37 = arith.addf %32, %36 : vector<32x64xf32>
    %c0_15 = arith.constant 0 : index
    %c0_16 = arith.constant 0 : index
    %38 = vector.load %arg6[%c0_15, %c0_16] : memref<64x64xbf16, #tpu.memory_space<vmem>>, vector<64x64xbf16>
    %cst_17 = arith.constant dense<0.000000e+00> : vector<32x64xf32>
    %39 = tpu.matmul %30, %38, %cst_17 {dimension_numbers = #tpu.dot_dimension_numbers<[1], [0], [0], [1], [0, 0, 1, 1], [], []>} : vector<32x64xbf16>, vector<64x64xbf16>, vector<32x64xf32> -> vector<32x64xf32>
    %c0_18 = arith.constant 0 : index
    %c0_19 = arith.constant 0 : index
    %40 = vector.load %arg9[%c0_18, %c0_19] : memref<1x64xf32, #tpu.memory_space<vmem>>, vector<1x64xf32>
    %41 = vector.shape_cast %40 : vector<1x64xf32> to vector<64xf32>
    %42 = vector.shape_cast %41 : vector<64xf32> to vector<1x64xf32>
    %43 = vector.broadcast %42 : vector<1x64xf32> to vector<32x64xf32>
    %44 = arith.addf %39, %43 : vector<32x64xf32>
    %c0_20 = arith.constant 0 : index
    %c0_21 = arith.constant 0 : index
    %45 = vector.load %arg7[%c0_20, %c0_21] : memref<64x64xbf16, #tpu.memory_space<vmem>>, vector<64x64xbf16>
    %cst_22 = arith.constant dense<0.000000e+00> : vector<32x64xf32>
    %46 = tpu.matmul %30, %45, %cst_22 {dimension_numbers = #tpu.dot_dimension_numbers<[1], [0], [0], [1], [0, 0, 1, 1], [], []>} : vector<32x64xbf16>, vector<64x64xbf16>, vector<32x64xf32> -> vector<32x64xf32>
    %c0_23 = arith.constant 0 : index
    %c0_24 = arith.constant 0 : index
    %47 = vector.load %arg10[%c0_23, %c0_24] : memref<1x64xf32, #tpu.memory_space<vmem>>, vector<1x64xf32>
    %48 = vector.shape_cast %47 : vector<1x64xf32> to vector<64xf32>
    %49 = vector.shape_cast %48 : vector<64xf32> to vector<1x64xf32>
    %50 = vector.broadcast %49 : vector<1x64xf32> to vector<32x64xf32>
    %51 = arith.addf %46, %50 : vector<32x64xf32>
    %52 = arith.truncf %37 : vector<32x64xf32> to vector<32x64xbf16>
    %c0_25 = arith.constant 0 : index
    %c0_26 = arith.constant 0 : index
    %c0_27 = arith.constant 0 : index
    %53 = vector.load %arg11[%c0_25, %c0_26, %c0_27] : memref<1x32x64xbf16, #tpu.memory_space<vmem>>, vector<1x32x64xbf16>
    %54 = vector.shape_cast %53 : vector<1x32x64xbf16> to vector<32x64xbf16>
    %55 = vector.shape_cast %52 : vector<32x64xbf16> to vector<1x32x64xbf16>
    tpu.vector_store %arg11[%c0_25, %c0_26, %c0_27], %55 {strides = array<i32>} : memref<1x32x64xbf16, #tpu.memory_space<vmem>>, vector<1x32x64xbf16>,
    %56 = arith.truncf %44 : vector<32x64xf32> to vector<32x64xbf16>
    %c0_28 = arith.constant 0 : index
    %c0_29 = arith.constant 0 : index
    %c0_30 = arith.constant 0 : index
    %57 = vector.load %arg12[%c0_28, %c0_29, %c0_30] : memref<1x32x64xbf16, #tpu.memory_space<vmem>>, vector<1x32x64xbf16>
    %58 = vector.shape_cast %57 : vector<1x32x64xbf16> to vector<32x64xbf16>
    %59 = vector.shape_cast %56 : vector<32x64xbf16> to vector<1x32x64xbf16>
    tpu.vector_store %arg12[%c0_28, %c0_29, %c0_30], %59 {strides = array<i32>} : memref<1x32x64xbf16, #tpu.memory_space<vmem>>, vector<1x32x64xbf16>,
    %60 = arith.truncf %51 : vector<32x64xf32> to vector<32x64xbf16>
    %c0_31 = arith.constant 0 : index
    %c0_32 = arith.constant 0 : index
    %c0_33 = arith.constant 0 : index
    %61 = vector.load %arg13[%c0_31, %c0_32, %c0_33] : memref<1x32x64xbf16, #tpu.memory_space<vmem>>, vector<1x32x64xbf16>
    %62 = vector.shape_cast %61 : vector<1x32x64xbf16> to vector<32x64xbf16>
    %63 = vector.shape_cast %60 : vector<32x64xbf16> to vector<1x32x64xbf16>
    tpu.vector_store %arg13[%c0_31, %c0_32, %c0_33], %63 {strides = array<i32>} : memref<1x32x64xbf16, #tpu.memory_space<vmem>>, vector<1x32x64xbf16>,
    return
  }
  func.func @transform_0(%arg0: i32, %arg1: i32) -> (i32, i32, i32) {
    %c0_i32 = arith.constant 0 : i32
    %c0_i32_0 = arith.constant 0 : i32
    return %arg0, %arg1, %c0_i32 : i32, i32, i32
  }
  func.func @transform_1(%arg0: i32, %arg1: i32) -> (i32, i32) {
    %c0_i32 = arith.constant 0 : i32
    %c0_i32_0 = arith.constant 0 : i32
    %c0_i32_1 = arith.constant 0 : i32
    return %c0_i32, %c0_i32_0 : i32, i32
  }
  func.func @transform_2(%arg0: i32, %arg1: i32) -> (i32, i32) {
    %c0_i32 = arith.constant 0 : i32
    %c0_i32_0 = arith.constant 0 : i32
    %c0_i32_1 = arith.constant 0 : i32
    return %c0_i32, %c0_i32_0 : i32, i32
  }
  func.func @transform_3(%arg0: i32, %arg1: i32) -> (i32, i32) {
    %c0_i32 = arith.constant 0 : i32
    %c0_i32_0 = arith.constant 0 : i32
    %c0_i32_1 = arith.constant 0 : i32
    return %c0_i32, %c0_i32_0 : i32, i32
  }
  func.func @transform_4(%arg0: i32, %arg1: i32) -> (i32, i32) {
    %c0_i32 = arith.constant 0 : i32
    %c0_i32_0 = arith.constant 0 : i32
    %c0_i32_1 = arith.constant 0 : i32
    return %c0_i32, %c0_i32_0 : i32, i32
  }
  func.func @transform_5(%arg0: i32, %arg1: i32) -> (i32, i32) {
    %c0_i32 = arith.constant 0 : i32
    %c0_i32_0 = arith.constant 0 : i32
    %c0_i32_1 = arith.constant 0 : i32
    return %c0_i32, %c0_i32_0 : i32, i32
  }
  func.func @transform_6(%arg0: i32, %arg1: i32) -> (i32, i32) {
    %c0_i32 = arith.constant 0 : i32
    %c0_i32_0 = arith.constant 0 : i32
    %c0_i32_1 = arith.constant 0 : i32
    return %c0_i32, %c0_i32_0 : i32, i32
  }
  func.func @transform_7(%arg0: i32, %arg1: i32) -> (i32, i32) {
    %c0_i32 = arith.constant 0 : i32
    %c0_i32_0 = arith.constant 0 : i32
    %c0_i32_1 = arith.constant 0 : i32
    return %c0_i32, %c0_i32_0 : i32, i32
  }
  func.func @transform_8(%arg0: i32, %arg1: i32) -> (i32, i32) {
    %c0_i32 = arith.constant 0 : i32
    %c0_i32_0 = arith.constant 0 : i32
    %c0_i32_1 = arith.constant 0 : i32
    return %c0_i32, %c0_i32_0 : i32, i32
  }
  func.func @transform_9(%arg0: i32, %arg1: i32) -> (i32, i32, i32) {
    %c0_i32 = arith.constant 0 : i32
    %c0_i32_0 = arith.constant 0 : i32
    return %arg0, %arg1, %c0_i32 : i32, i32, i32
  }
  func.func @transform_10(%arg0: i32, %arg1: i32) -> (i32, i32, i32) {
    %c0_i32 = arith.constant 0 : i32
    %c0_i32_0 = arith.constant 0 : i32
    return %arg0, %arg1, %c0_i32 : i32, i32, i32
  }
  func.func @transform_11(%arg0: i32, %arg1: i32) -> (i32, i32, i32) {
    %c0_i32 = arith.constant 0 : i32
    %c0_i32_0 = arith.constant 0 : i32
    return %arg0, %arg1, %c0_i32 : i32, i32, i32
  }
}

module attributes {stable_mosaic.version = 11 : i64} {
  func.func @ln_qkv_kernel(%arg0: i32, %arg1: i32, %arg2: memref<1x32x64xf32, #tpu.memory_space<vmem>>, %arg3: memref<1x64xf32, #tpu.memory_space<vmem>>, %arg4: memref<1x64xf32, #tpu.memory_space<vmem>>, %arg5: memref<64x64xbf16, #tpu.memory_space<vmem>>, %arg6: memref<64x64xbf16, #tpu.memory_space<vmem>>, %arg7: memref<64x64xbf16, #tpu.memory_space<vmem>>, %arg8: memref<1x64xf32, #tpu.memory_space<vmem>>, %arg9: memref<1x64xf32, #tpu.memory_space<vmem>>, %arg10: memref<1x64xf32, #tpu.memory_space<vmem>>, %arg11: memref<1x32x64xbf16, #tpu.memory_space<vmem>>, %arg12: memref<1x32x64xbf16, #tpu.memory_space<vmem>>, %arg13: memref<1x32x64xbf16, #tpu.memory_space<vmem>>) attributes {dimension_semantics = [#tpu.dimension_semantics<parallel>, #tpu.dimension_semantics<parallel>], iteration_bounds = array<i64: 2, 2>, scalar_prefetch = 0 : i64, scratch_operands = 0 : i64, tpu.core_type = #tpu.core_type<tc>, window_params = [{transform_indices = @transform_0, window_bounds = array<i64: 1, 32, 64>}, {pipeline_mode = #tpu.pipeline_mode<synchronous>, transform_indices = @transform_1, window_bounds = array<i64: 1, 64>}, {pipeline_mode = #tpu.pipeline_mode<synchronous>, transform_indices = @transform_2, window_bounds = array<i64: 1, 64>}, {pipeline_mode = #tpu.pipeline_mode<synchronous>, transform_indices = @transform_3, window_bounds = array<i64: 64, 64>}, {pipeline_mode = #tpu.pipeline_mode<synchronous>, transform_indices = @transform_4, window_bounds = array<i64: 64, 64>}, {pipeline_mode = #tpu.pipeline_mode<synchronous>, transform_indices = @transform_5, window_bounds = array<i64: 64, 64>}, {pipeline_mode = #tpu.pipeline_mode<synchronous>, transform_indices = @transform_6, window_bounds = array<i64: 1, 64>}, {pipeline_mode = #tpu.pipeline_mode<synchronous>, transform_indices = @transform_7, window_bounds = array<i64: 1, 64>}, {pipeline_mode = #tpu.pipeline_mode<synchronous>, transform_indices = @transform_8, window_bounds = array<i64: 1, 64>}, {transform_indices = @transform_9, window_bounds = array<i64: 1, 32, 64>}, {transform_indices = @transform_10, window_bounds = array<i64: 1, 32, 64>}, {transform_indices = @transform_11, window_bounds = array<i64: 1, 32, 64>}]} {
    %c0 = arith.constant 0 : index
    %c0_0 = arith.constant 0 : index
    %c0_1 = arith.constant 0 : index
    %0 = vector.load %arg2[%c0, %c0_0, %c0_1] : memref<1x32x64xf32, #tpu.memory_space<vmem>>, vector<1x32x64xf32>
    %1 = vector.shape_cast %0 : vector<1x32x64xf32> to vector<32x64xf32>
    %c0_2 = arith.constant 0 : index
    %c0_3 = arith.constant 0 : index
    %2 = vector.load %arg3[%c0_2, %c0_3] : memref<1x64xf32, #tpu.memory_space<vmem>>, vector<1x64xf32>
    %3 = vector.shape_cast %2 : vector<1x64xf32> to vector<64xf32>
    %c0_4 = arith.constant 0 : index
    %c0_5 = arith.constant 0 : index
    %4 = vector.load %arg4[%c0_4, %c0_5] : memref<1x64xf32, #tpu.memory_space<vmem>>, vector<1x64xf32>
    %5 = vector.shape_cast %4 : vector<1x64xf32> to vector<64xf32>
    %cst = arith.constant dense<0.000000e+00> : vector<32xf32>
    %6 = vector.multi_reduction <add>, %1, %cst [1] : vector<32x64xf32> to vector<32xf32>
    %7 = vector.shape_cast %6 : vector<32xf32> to vector<32x1xf32>
    %cst_6 = arith.constant 6.400000e+01 : f32
    %8 = vector.broadcast %cst_6 : f32 to vector<32x1xf32>
    %9 = arith.divf %7, %8 : vector<32x1xf32>
    %10 = vector.broadcast %9 : vector<32x1xf32> to vector<32x64xf32>
    %11 = arith.subf %1, %10 : vector<32x64xf32>
    %12 = arith.mulf %11, %11 : vector<32x64xf32>
    %cst_7 = arith.constant dense<0.000000e+00> : vector<32xf32>
    %13 = vector.multi_reduction <add>, %12, %cst_7 [1] : vector<32x64xf32> to vector<32xf32>
    %14 = vector.shape_cast %13 : vector<32xf32> to vector<32x1xf32>
    %cst_8 = arith.constant 6.400000e+01 : f32
    %15 = vector.broadcast %cst_8 : f32 to vector<32x1xf32>
    %16 = arith.divf %14, %15 : vector<32x1xf32>
    %17 = vector.broadcast %9 : vector<32x1xf32> to vector<32x64xf32>
    %18 = arith.subf %1, %17 : vector<32x64xf32>
    %cst_9 = arith.constant 9.99999974E-6 : f32
    %19 = vector.broadcast %cst_9 : f32 to vector<32x1xf32>
    %20 = arith.addf %16, %19 : vector<32x1xf32>
    %21 = math.rsqrt %20 : vector<32x1xf32>
    %22 = vector.broadcast %21 : vector<32x1xf32> to vector<32x64xf32>
    %23 = arith.mulf %18, %22 : vector<32x64xf32>
    %24 = vector.shape_cast %3 : vector<64xf32> to vector<1x64xf32>
    %25 = vector.broadcast %24 : vector<1x64xf32> to vector<32x64xf32>
    %26 = arith.mulf %23, %25 : vector<32x64xf32>
    %27 = vector.shape_cast %5 : vector<64xf32> to vector<1x64xf32>
    %28 = vector.broadcast %27 : vector<1x64xf32> to vector<32x64xf32>
    %29 = arith.addf %26, %28 : vector<32x64xf32>
    %30 = arith.truncf %29 : vector<32x64xf32> to vector<32x64xbf16>
    %c0_10 = arith.constant 0 : index
    %c0_11 = arith.constant 0 : index
    %31 = vector.load %arg5[%c0_10, %c0_11] : memref<64x64xbf16, #tpu.memory_space<vmem>>, vector<64x64xbf16>
    %cst_12 = arith.constant dense<0.000000e+00> : vector<32x64xf32>
    %32 = tpu.matmul %30, %31, %cst_12 {dimension_numbers = #tpu.dot_dimension_numbers<[1], [0], [0], [1], [0, 0, 1, 1], [], []>} : vector<32x64xbf16>, vector<64x64xbf16>, vector<32x64xf32> -> vector<32x64xf32>
    %c0_13 = arith.constant 0 : index
    %c0_14 = arith.constant 0 : index
    %33 = vector.load %arg8[%c0_13, %c0_14] : memref<1x64xf32, #tpu.memory_space<vmem>>, vector<1x64xf32>
    %34 = vector.shape_cast %33 : vector<1x64xf32> to vector<64xf32>
    %35 = vector.shape_cast %34 : vector<64xf32> to vector<1x64xf32>
    %36 = vector.broadcast %35 : vector<1x64xf32> to vector<32x64xf32>
    %37 = arith.addf %32, %36 : vector<32x64xf32>
    %c0_15 = arith.constant 0 : index
    %c0_16 = arith.constant 0 : index
    %38 = vector.load %arg6[%c0_15, %c0_16] : memref<64x64xbf16, #tpu.memory_space<vmem>>, vector<64x64xbf16>
    %cst_17 = arith.constant dense<0.000000e+00> : vector<32x64xf32>
    %39 = tpu.matmul %30, %38, %cst_17 {dimension_numbers = #tpu.dot_dimension_numbers<[1], [0], [0], [1], [0, 0, 1, 1], [], []>} : vector<32x64xbf16>, vector<64x64xbf16>, vector<32x64xf32> -> vector<32x64xf32>
    %c0_18 = arith.constant 0 : index
    %c0_19 = arith.constant 0 : index
    %40 = vector.load %arg9[%c0_18, %c0_19] : memref<1x64xf32, #tpu.memory_space<vmem>>, vector<1x64xf32>
    %41 = vector.shape_cast %40 : vector<1x64xf32> to vector<64xf32>
    %42 = vector.shape_cast %41 : vector<64xf32> to vector<1x64xf32>
    %43 = vector.broadcast %42 : vector<1x64xf32> to vector<32x64xf32>
    %44 = arith.addf %39, %43 : vector<32x64xf32>
    %c0_20 = arith.constant 0 : index
    %c0_21 = arith.constant 0 : index
    %45 = vector.load %arg7[%c0_20, %c0_21] : memref<64x64xbf16, #tpu.memory_space<vmem>>, vector<64x64xbf16>
    %cst_22 = arith.constant dense<0.000000e+00> : vector<32x64xf32>
    %46 = tpu.matmul %30, %45, %cst_22 {dimension_numbers = #tpu.dot_dimension_numbers<[1], [0], [0], [1], [0, 0, 1, 1], [], []>} : vector<32x64xbf16>, vector<64x64xbf16>, vector<32x64xf32> -> vector<32x64xf32>
    %c0_23 = arith.constant 0 : index
    %c0_24 = arith.constant 0 : index
    %47 = vector.load %arg10[%c0_23, %c0_24] : memref<1x64xf32, #tpu.memory_space<vmem>>, vector<1x64xf32>
    %48 = vector.shape_cast %47 : vector<1x64xf32> to vector<64xf32>
    %49 = vector.shape_cast %48 : vector<64xf32> to vector<1x64xf32>
    %50 = vector.broadcast %49 : vector<1x64xf32> to vector<32x64xf32>
    %51 = arith.addf %46, %50 : vector<32x64xf32>
    %52 = arith.truncf %37 : vector<32x64xf32> to vector<32x64xbf16>
    %c0_25 = arith.constant 0 : index
    %c0_26 = arith.constant 0 : index
    %c0_27 = arith.constant 0 : index
    %53 = vector.load %arg11[%c0_25, %c0_26, %c0_27] : memref<1x32x64xbf16, #tpu.memory_space<vmem>>, vector<1x32x64xbf16>
    %54 = vector.shape_cast %53 : vector<1x32x64xbf16> to vector<32x64xbf16>
    %55 = vector.shape_cast %52 : vector<32x64xbf16> to vector<1x32x64xbf16>
    tpu.vector_store %arg11[%c0_25, %c0_26, %c0_27], %55 {strides = array<i32>} : memref<1x32x64xbf16, #tpu.memory_space<vmem>>, vector<1x32x64xbf16>,
    %56 = arith.truncf %44 : vector<32x64xf32> to vector<32x64xbf16>
    %c0_28 = arith.constant 0 : index
    %c0_29 = arith.constant 0 : index
    %c0_30 = arith.constant 0 : index
    %57 = vector.load %arg12[%c0_28, %c0_29, %c0_30] : memref<1x32x64xbf16, #tpu.memory_space<vmem>>, vector<1x32x64xbf16>
    %58 = vector.shape_cast %57 : vector<1x32x64xbf16> to vector<32x64xbf16>
    %59 = vector.shape_cast %56 : vector<32x64xbf16> to vector<1x32x64xbf16>
    tpu.vector_store %arg12[%c0_28, %c0_29, %c0_30], %59 {strides = array<i32>} : memref<1x32x64xbf16, #tpu.memory_space<vmem>>, vector<1x32x64xbf16>,
    %60 = arith.truncf %51 : vector<32x64xf32> to vector<32x64xbf16>
    %c0_31 = arith.constant 0 : index
    %c0_32 = arith.constant 0 : index
    %c0_33 = arith.constant 0 : index
    %61 = vector.load %arg13[%c0_31, %c0_32, %c0_33] : memref<1x32x64xbf16, #tpu.memory_space<vmem>>, vector<1x32x64xbf16>
    %62 = vector.shape_cast %61 : vector<1x32x64xbf16> to vector<32x64xbf16>
    %63 = vector.shape_cast %60 : vector<32x64xbf16> to vector<1x32x64xbf16>
    tpu.vector_store %arg13[%c0_31, %c0_32, %c0_33], %63 {strides = array<i32>} : memref<1x32x64xbf16, #tpu.memory_space<vmem>>, vector<1x32x64xbf16>,
    return
  }
  func.func @transform_0(%arg0: i32, %arg1: i32) -> (i32, i32, i32) {
    %c0_i32 = arith.constant 0 : i32
    %c0_i32_0 = arith.constant 0 : i32
    return %arg0, %arg1, %c0_i32 : i32, i32, i32
  }
  func.func @transform_1(%arg0: i32, %arg1: i32) -> (i32, i32) {
    %c0_i32 = arith.constant 0 : i32
    %c0_i32_0 = arith.constant 0 : i32
    %c0_i32_1 = arith.constant 0 : i32
    return %c0_i32, %c0_i32_0 : i32, i32
  }
  func.func @transform_2(%arg0: i32, %arg1: i32) -> (i32, i32) {
    %c0_i32 = arith.constant 0 : i32
    %c0_i32_0 = arith.constant 0 : i32
    %c0_i32_1 = arith.constant 0 : i32
    return %c0_i32, %c0_i32_0 : i32, i32
  }
  func.func @transform_3(%arg0: i32, %arg1: i32) -> (i32, i32) {
    %c0_i32 = arith.constant 0 : i32
    %c0_i32_0 = arith.constant 0 : i32
    %c0_i32_1 = arith.constant 0 : i32
    return %c0_i32, %c0_i32_0 : i32, i32
  }
  func.func @transform_4(%arg0: i32, %arg1: i32) -> (i32, i32) {
    %c0_i32 = arith.constant 0 : i32
    %c0_i32_0 = arith.constant 0 : i32
    %c0_i32_1 = arith.constant 0 : i32
    return %c0_i32, %c0_i32_0 : i32, i32
  }
  func.func @transform_5(%arg0: i32, %arg1: i32) -> (i32, i32) {
    %c0_i32 = arith.constant 0 : i32
    %c0_i32_0 = arith.constant 0 : i32
    %c0_i32_1 = arith.constant 0 : i32
    return %c0_i32, %c0_i32_0 : i32, i32
  }
  func.func @transform_6(%arg0: i32, %arg1: i32) -> (i32, i32) {
    %c0_i32 = arith.constant 0 : i32
    %c0_i32_0 = arith.constant 0 : i32
    %c0_i32_1 = arith.constant 0 : i32
    return %c0_i32, %c0_i32_0 : i32, i32
  }
  func.func @transform_7(%arg0: i32, %arg1: i32) -> (i32, i32) {
    %c0_i32 = arith.constant 0 : i32
    %c0_i32_0 = arith.constant 0 : i32
    %c0_i32_1 = arith.constant 0 : i32
    return %c0_i32, %c0_i32_0 : i32, i32
  }
  func.func @transform_8(%arg0: i32, %arg1: i32) -> (i32, i32) {
    %c0_i32 = arith.constant 0 : i32
    %c0_i32_0 = arith.constant 0 : i32
    %c0_i32_1 = arith.constant 0 : i32
    return %c0_i32, %c0_i32_0 : i32, i32
  }
  func.func @transform_9(%arg0: i32, %arg1: i32) -> (i32, i32, i32) {
    %c0_i32 = arith.constant 0 : i32
    %c0_i32_0 = arith.constant 0 : i32
    return %arg0, %arg1, %c0_i32 : i32, i32, i32
  }
  func.func @transform_10(%arg0: i32, %arg1: i32) -> (i32, i32, i32) {
    %c0_i32 = arith.constant 0 : i32
    %c0_i32_0 = arith.constant 0 : i32
    return %arg0, %arg1, %c0_i32 : i32, i32, i32
  }
  func.func @transform_11(%arg0: i32, %arg1: i32) -> (i32, i32, i32) {
    %c0_i32 = arith.constant 0 : i32
    %c0_i32_0 = arith.constant 0 : i32
    return %arg0, %arg1, %c0_i32 : i32, i32, i32
  }
}

</mosaic_0001>

<bundles_post_ra>
// kernel: tpu_custom_call.1
= control target key start
LH: loop header
LB: loop body
LE: loop exit
PB: predicated region body
PF: predicated region fallthrough
CT: control target
= control target key end

     0   :  { %s2143_s0 = inlined_call_operand.hbm [shape: f32[2,64,64], index: 0, kind: input, shape index: {}]   ;;  %s2144_s1 = inlined_call_operand.vmem [shape: f32[1,64], index: 1, kind: input, shape index: {}]   ;;  %s2145_s2 = inlined_call_operand.vmem [shape: f32[1,64], index: 2, kind: input, shape index: {}]   ;;  %s2146_s3 = inlined_call_operand.hbm [shape: bf16[64,64], index: 3, kind: input, shape index: {}]   ;;  %s2147_s4 = inlined_call_operand.hbm [shape: bf16[64,64], index: 4, kind: input, shape index: {}]   ;;  %s2148_s5 = inlined_call_operand.hbm [shape: bf16[64,64], index: 5, kind: input, shape index: {}]   ;;  %s2149_s6 = inlined_call_operand.vmem [shape: f32[1,64], index: 6, kind: input, shape index: {}]   ;;  %s2150_s7 = inlined_call_operand.vmem [shape: f32[1,64], index: 7, kind: input, shape index: {}]   ;;  %s2151_s8 = inlined_call_operand.vmem [shape: f32[1,64], index: 8, kind: input, shape index: {}]   ;;  %s2152_s9 = inlined_call_operand.hbm [shape: bf16[2,64,64], index: 9, kind: output, shape index: {0}]   ;;  %s2153_s10 = inlined_call_operand.hbm [shape: bf16[2,64,64], index: 10, kind: output, shape index: {1}]   ;;  %s2154_s11 = inlined_call_operand.hbm [shape: bf16[2,64,64], index: 11, kind: output, shape index: {2}]  }
   0x1   :  { %2167 = sst [smem:[#allocation24_spill]] %s2146_s3 }
   0x2   :  { %2168 = sst [smem:[#allocation25_spill]] %s2147_s4 }
   0x3   :  { %2169 = sst [smem:[#allocation26_spill]] %s2148_s5 }
   0x4   :  { %2170 = sst [smem:[#allocation27_spill]] %s2150_s7 }
   0x5   :  { %2171 = sst [smem:[#allocation28_spill]] %s2151_s8 }
   0x6   :  { %2172 = sst [smem:[#allocation29_spill]] %s2152_s9 }
   0x7   :  { %2173 = sst [smem:[#allocation30_spill]] %s2153_s10 }
   0x8   :  { %2174 = sst [smem:[#allocation31_spill]] %s2154_s11 }
   0x9   :  { %17 = vsyncpa [#allocation3], 0 }
   0xa   :  { %19 = vsyncpa [#allocation3 + $0x1], 0 }
   0xb   :  { %20 = vsyncpa [#allocation6], 0 }
   0xc   :  { %21 = vsyncpa [#allocation9], 0 }
   0xd   :  { %22 = vsyncpa [#allocation4], 0 }
   0xe   :  { %24 = vsyncpa [#allocation4 + $0x1], 0 }
   0xf   :  { %25 = vsyncpa [#allocation12], 0 }
  0x10   :  { %27 = vsyncpa [#allocation12 + $0x1], 0  ;;  %s1775_s17 = smov 0   ;;  %s1777_s18 = smov 0  }
  0x11   :  { %s1779_s19 = smov 0   ;;  %s1781_s20 = smov 0  }
  0x12   :  { %s1783_s21 = smov 0   ;;  %s1785_s22 = smov 0  }
  0x13   :  { %s1787_s23 = smov 0   ;;  %s1789_s24 = smov 0  }
  0x14 LB: > { %2175 = sst [smem:[#allocation19_spill]] %s1672_s17  ;;  %s1816_s25 = sadd.s32 4294967295, %s1700_s24   ;;  %s1700_s24 = sphi %s1789_s24, %s33_s24   ;;  %s1696_s23 = sphi %s1787_s23, %s2213_s23   ;;  %s1692_s22 = sphi %s1785_s22, %s2208_s22   ;;  %s1688_s21 = sphi %s1783_s21, %s2212_s21   ;;  %s1684_s20 = sphi %s1781_s20, %s2207_s20   ;;  %s1680_s19 = sphi %s1779_s19, %s2211_s19   ;;  %s1676_s18 = sphi %s1777_s18, %s2210_s18   ;;  %s1672_s17 = sphi %s1775_s17, %s2209_s17  }
  0x15   : > { %2176 = sst [smem:[#allocation20_spill]] %s1692_s22  ;;  %s2155_s26 = sadd.s32 4294967294, %s1700_s24  }
  0x16   : > { %p67_p0 = scmp.ne.s32.totalorder %s1676_s18, %s1672_s17  ;;  %p2159_p1 = scmp.eq.s32.totalorder %s1816_s25, 0 }
  0x17   : > { %p267_p3 = scmp.eq.s32.totalorder %s2155_s26, 3  ;;  %p1157_p5 = scmp.ge.s32.totalorder %s1700_s24, 1 }
  0x18   : > { %p1827_p4 = por %p2159_p1, %p67_p0  ;;  %p330_p7 = scmp.lt.s32.totalorder %s1700_s24, 5 }
  0x19   : > { %p1832_p6 = por %p267_p3, %p67_p0  ;;  %s1702_s30 = smov [#allocation5]  }
  0x1a   : > { %s2177_s27 = scalar_select %p1827_p4, 1, 0 }
  0x1b   : > { %s2178_s28 = scalar_select %p1832_p6, 1, 0 }
  0x1c   : > { %p1837_p8 = pnand %p1157_p5, %p330_p7  ;;  %s348_s12 = sshll.u32 %s1702_s30, 4  ;;  %s349_s12 = int_to_ptr.vmem [resolvable:$true] %s348_s12 }
  0x1d   : > { %2179 = sst [smem:[#allocation21_spill]] %s2178_s28  ;;  %s1703_s14 = smov [#allocation7]  }
  0x1e   : > { %p1309_p9 = pneg %p1837_p8  ;;  %s361_s15 = sshll.u32 %s1703_s14, 4  ;;  %s362_s15 = int_to_ptr.vmem [resolvable:$true] %s361_s15 }
  0x1f   : > { %s1704_s16 = smov [#allocation8]   ;;  %s1445_s28 = scalar_lea.vmem %s349_s12, 512 }
  0x20   : > { %p1845_p10 = pnand %p1309_p9, %p2159_p1  ;;  %s374_s26 = sshll.u32 %s1704_s16, 4  ;;  %s375_s26 = int_to_ptr.vmem [resolvable:$true] %s374_s26 }
  0x21   : > { %p1446_p12 = scmp.ne.s32.totalorder %s349_s12, %s1445_s28  ;;  %p1453_p3 = scmp.lt.s32.totalorder %s349_s12, %s349_s12 }
  0x22   : > { %p1436_p11 = pneg %p1845_p10  ;;  %p1454_p5 = scmp.lt.s32.totalorder %s1445_s28, %s1445_s28 }
  0x24   : > { %p1448_p13 = pnand %p1446_p12, %p1436_p11  ;;  %p1455_p7 = por %p1454_p5, %p1453_p3 }
  0x26   : > { %p1449_p0 = pneg %p1448_p13 }
  0x28   : > { %p1456_p9 = pnand %p1455_p7, %p1449_p0 }
  0x2a   : > { %1459 = shalt.err (!%p1456_p9)
}
  0x2b   : > { %s1705_s30 = smov 64   ;;  %s1706_s14 = smov 4  }
  0x2c   : > { %s2182_s3 = sld [smem:[#allocation24_spill]]  ;;  %s1471_s11 = scalar_lea.vmem %s362_s15, 512 }
  0x2d   : > { %p1472_p1 = scmp.ne.s32.totalorder %s362_s15, %s1471_s11  ;;  %p1479_p2 = scmp.lt.s32.totalorder %s362_s15, %s362_s15 }
  0x2e   : > { %p1480_p6 = scmp.lt.s32.totalorder %s1471_s11, %s1471_s11 }
  0x2f   : > { %p1474_p12 = pnand %p1472_p1, %p1436_p11 }
  0x30   : > { %p1481_p3 = por %p1480_p6, %p1479_p2 }
  0x31   : > { %p1475_p13 = pneg %p1474_p12 }
  0x32   : > { %1312 = dma.hbm_to_vmem [thread:$0]  (!%p1845_p10), %s2182_s3, 512, %s349_s12, [#allocation6], %s1705_s30, %s1705_s30, %s1706_s14  }
  0x33   : > { %p1482_p0 = pnand %p1481_p3, %p1475_p13 }
  0x35   : > { %1485 = shalt.err (!%p1482_p0)
}
  0x36   : > { %s2183_s4 = sld [smem:[#allocation25_spill]]  ;;  %s1497_s17 = scalar_lea.vmem %s375_s26, 512 }
  0x37   : > { %p1498_p5 = scmp.ne.s32.totalorder %s375_s26, %s1497_s17  ;;  %p1505_p9 = scmp.lt.s32.totalorder %s375_s26, %s375_s26 }
  0x38   : > { %p1506_p12 = scmp.lt.s32.totalorder %s1497_s17, %s1497_s17 }
  0x39   : > { %p1500_p7 = pnand %p1498_p5, %p1436_p11 }
  0x3a   : > { %p1507_p4 = por %p1506_p12, %p1505_p9 }
  0x3b   : > { %p1501_p1 = pneg %p1500_p7 }
  0x3c   : > { %1315 = dma.hbm_to_vmem [thread:$0]  (!%p1845_p10), %s2183_s4, 512, %s362_s15, [#allocation6], %s1705_s30, %s1705_s30, %s1706_s14  }
  0x3d   : > { %p1508_p2 = pnand %p1507_p4, %p1501_p1 }
  0x3f   : > { %1511 = shalt.err (!%p1508_p2)
}
  0x40   : > { %s2184_s5 = sld [smem:[#allocation26_spill]]  ;;  %s42_s8 = sadd.s32 1, %s1692_s22 }
  0x41   : > { %p43_p4 = scmp.ge.s32.totalorder %s42_s8, 2  ;;  %s45_s13 = sadd.s32 1, %s1696_s23 }
  0x42   : > { %s54_s15 = sadd.s32 1, %s1680_s19  ;;  %p61_p6 = scmp.ne.s32.totalorder %s1680_s19, %s1676_s18 }
  0x43   : > { %s2215_s8 = smov (%p43_p4, %s42_s8), 0  ;;  %s2217_s13 = smov (!%p43_p4, %s45_s13), %s1696_s23 }
  0x44   : > { %2185 = sst [smem:[#allocation22_spill]] %s2215_s8  ;;  %s50_s16 = ssub.s32 %s1692_s22, %s2215_s8 }
  0x45   : > { %p62_p11 = scmp.eq.s32.totalorder %s1700_s24, 0  ;;  %p47_p13 = scmp.ge.s32.totalorder %s2217_s13, 2 }
  0x46   : > { %1318 = dma.hbm_to_vmem [thread:$0]  (!%p1845_p10), %s2184_s5, 512, %s375_s26, [#allocation9], %s1705_s30, %s1705_s30, %s1706_s14  }
  0x47   : > { %p2186_p3 = scmp.eq.s32.totalorder %s1816_s25, 3  ;;  %p1892_p10 = por %p62_p11, %p61_p6 }
  0x48   : > { %p1336_p5 = scmp.lt.s32.totalorder %s1700_s24, 4  ;;  %s2219_s13 = smov (%p47_p13, %s2217_s13), 0 }
  0x49   : > { %p1888_p0 = por %p2186_p3, %p61_p6  ;;  %s397_s30 = sand.u32 1, %s1680_s19  }
  0x4a   : > { %s1163_s14 = sshll.u32 %s1692_s22, 2  ;;  %s49_s17 = ssub.s32 %s1696_s23, %s2219_s13 }
  0x4b   : > { %s2187_s28 = scalar_select %p1888_p0, 1, 0 }
  0x4c   : > { %s51_s11 = sor.u32 %s50_s16, %s49_s17  ;;  %s1162_s12 = sshll.u32 %s397_s30, 5 }
  0x4d   : > { %2188 = sst [smem:[#allocation23_spill]] %s2187_s28  ;;  %p52_p7 = scmp.eq.s32.totalorder %s51_s11, 0 }
  0x4e   : > { %s1164_s3 = sshll.u32 %s1696_s23, 3  ;;  %s401_s4 = scalar_lea.vmem [#allocation2], %s1162_s12 }
  0x4f   : > { %s410_s5 = sshll.u32 %s401_s4, 4  ;;  %s407_s9 = sadd.s32 %s1164_s3, %s1163_s14  ;;  %s411_s5 = int_to_ptr.vmem [resolvable:$true] %s410_s5 }
  0x50   : > { %s1905_s8 = scalar_select %p52_p7, %s1680_s19, %s54_s15  }
  0x51   : > { %s1165_s10 = sshll.u32 %s407_s9, 7  ;;  %p1911_p1 = pnand %p1336_p5, %p1892_p10 }
  0x52   : > { %s409_s16 = scalar_lea.hbm %s2143_s0, %s1165_s10  ;;  %s398_s17 = scalar_lea.sflag [#allocation3], %s397_s30 }
  0x53   : > { %p1514_p9 = pneg %p1911_p1  ;;  %s1525_s4 = scalar_lea.vmem %s411_s5, 512 }
  0x54   : > { %p1526_p12 = scmp.ne.s32.totalorder %s411_s5, %s1525_s4  ;;  %s1707_s3 = smov [#allocation2]  }
  0x55   : > { %s1530_s9 = sshll.u32 %s1707_s3, 4  ;;  %s1531_s9 = int_to_ptr.vmem [resolvable:$false] %s1530_s9 }
  0x56   : > { %p1528_p2 = pnand %p1526_p12, %p1514_p9  ;;  %s1532_s15 = scalar_lea.vmem %s1531_s9, 1024 }
  0x57   : > { %p1533_p6 = scmp.lt.s32.totalorder %s411_s5, %s1531_s9  ;;  %p1534_p11 = scmp.lt.s32.totalorder %s1532_s15, %s1525_s4 }
  0x58   : > { %p1529_p4 = pneg %p1528_p2 }
  0x59   : > { %p1535_p13 = por %p1534_p11, %p1533_p6 }
  0x5b   : > { %p1536_p3 = pnand %p1535_p13, %p1529_p4 }
  0x5d   : > { %1539 = shalt.err (!%p1536_p3)
}
  0x5e   : > { %s1708_s26 = smov 128   ;;  %s1709_s7 = smov 8  }
  0x5f   : > { %1322 = dma.hbm_to_vmem [thread:$0]  (!%p1911_p1), %s409_s16, 512, %s411_s5, %s398_s17, %s1708_s26, %s1708_s26, %s1709_s7  }
  0x60   : > { %422 = sbr.rel (%p1837_p8) target bundleno = 691 (0x2b3), region = 56  ;;  %s1925_s10 = sand.u32 (!%p1837_p8), 1, %s1676_s18  }
  0x61   : > { %s1167_s22 = sshll.u32 (!%p1837_p8), %s1925_s10, 5  ;;  %s425_s30 = scalar_lea.sflag (!%p1837_p8), [#allocation3], %s1925_s10 }
  0x62   : > { %s428_s14 = scalar_lea.vmem (!%p1837_p8), [#allocation2], %s1167_s22  ;;  %p2191_p10 = scmp.ne.s32.totalorder (!%p1837_p8), %s2177_s27, 0 }
  0x65   : > { %1651 = dma.done.wait (%p2191_p10), %s425_s30, 512  }
  0x66   : > { %1653 = vsyncadd (%p2191_p10), %s425_s30, 4294966784  ;;  %p2192_p5 = scmp.eq.s32.totalorder %s1816_s25, 0 }
  0x68   : > { %1655 = dma.done.wait (%p2192_p5), [#allocation6], 1024   ;;  %p2193_p7 = pmov %p2192_p5 }
  0x69   : > { %p2194_p8 = pmov %p2192_p5 }
  0x6a   : > { %1657 = vsyncadd (%p2193_p7), [#allocation6], 4294966272 }
  0x6b   : > { %1659 = dma.done.wait (%p2194_p8), [#allocation9], 512   ;;  %p2195_p1 = pmov %p2192_p5 }
  0x6c   : > { %vm500_vm0 = vcmask 523264   ;;  %v494_v0 = vld [vmem:[%s428_s14] sm:$0xff]  ;;  %v496_v1 = vld [vmem:[%s428_s14 + $0x10] sm:$0xff]  ;;  %v495_v2 = vld [vmem:[%s428_s14 + $0x8] sm:$0xff]  ;;  %s2196_s4 = sld [smem:[#allocation27_spill]]  ;;  %s1983_s3 = sshll.u32 %s1925_s10, 4 }
  0x6d   : > { %1661 = vsyncadd (%p2195_p1), [#allocation9], 4294966784  ;;  %v501_v3 = vsel %vm500_vm0, %v494_v0, 0.0  ;;  %v507_v4 = vsel %vm500_vm0, %v496_v1, 0.0  ;;  %v497_v5 = vld [vmem:[%s428_s14 + $0x18] sm:$0xff]  ;;  %v504_v6 = vsel %vm500_vm0, %v495_v2, 0.0 }
  0x6e   : > { %502 = vadd.xlane.f32.xlu0 %v501_v3  ;;  %508 = vadd.xlane.f32.xlu1 %v507_v4  ;;  %v510_v7 = vsel %vm500_vm0, %v497_v5, 0.0  ;;  %v1414_v28 = vld [vmem:[#allocation5 + $0x18] sm:$0xff]   ;;  %v1416_v30 = vld [vmem:[#allocation5 + $0x10] sm:$0xff]   ;;  %v1418_v32 = vld [vmem:[#allocation5 + $0x8] sm:$0xff]   ;;  %s1212_s9 = sshll.u32 %s1684_s20, 2  ;;  %s1213_s15 = sshll.u32 %s1688_s21, 3 }
  0x6f   : > { %v1415_v29 = vld [vmem:[#allocation7 + $0x18] sm:$0xff]   ;;  %v1417_v31 = vld [vmem:[#allocation7 + $0x10] sm:$0xff]   ;;  %1253 = vmatprep.subr.bf16.mxu0 %v1414_v28  ;;  %v1419_v33 = vld [vmem:[#allocation7 + $0x8] sm:$0xff]   ;;  %vm862_vm1 = vcmask 519168   ;;  %s930_s26 = sadd.s32 %s1213_s15, %s1212_s9  ;;  %s1988_s7 = scalar_lea.vmem [#allocation10], %s1983_s3 }
  0x70   : > { %1265 = vmatprep.subr.bf16.mxu1 %v1415_v29  ;;  %1254 = vmatpush3.bf16.msra.mxu0 %v1414_v28  ;;  %v1420_v34 = vld [vmem:[#allocation5] sm:$0xff]   ;;  %v1422_v36 = vld [vmem:[#allocation8 + $0x18] sm:$0xff]   ;;  %s933_s22 = sshll.u32 %s1988_s7, 4  ;;  %s481_s30 = scalar_lea.vmem [#allocation11], %s1983_s3  ;;  %s1998_s22 = int_to_ptr.vmem [resolvable:$true] %s933_s22 }
  0x71   : > { %1266 = vmatpush3.bf16.msra.mxu1 %v1415_v29  ;;  %1255 = vmatprep.subr.bf16.mxu0 %v1416_v30  ;;  %v1421_v35 = vld [vmem:[#allocation7] sm:$0xff]   ;;  %s951_s20 = sshll.u32 %s481_s30, 4  ;;  %s912_s21 = sand.u32 1, %s1816_s25   ;;  %s2000_s20 = int_to_ptr.vmem [resolvable:$true] %s951_s20 }
  0x72   : > { %505 = vadd.xlane.f32.xlu0 %v504_v6  ;;  %511 = vadd.xlane.f32.xlu1 %v510_v7  ;;  %v1174_v51 = vld [vmem:[%s2144_s1] ss:$0 sm:$0xff]  ;;  %v1424_v6 = vld [vmem:[#allocation8 + $0x8] sm:$0xff]   ;;  %s1996_s14 = sshll.u32 %s930_s26, 6  ;;  %s2198_s29 = sld [smem:[#allocation30_spill]] }
  0x73   : > { %1267 = vmatprep.subr.bf16.mxu1 %v1417_v31  ;;  %v1175_v56 = vld [vmem:[%s2145_s2] ss:$0 sm:$0xff]  ;;  %s2199_s16 = sld [smem:[#allocation29_spill]]  ;;  %s1540_s9 = scalar_lea.vmem %s2000_s20, 256 }
  0x74   : > { %1256 = vmatpush3.bf16.msra.mxu0 %v1416_v30  ;;  %v1425_v7 = vld [vmem:[#allocation8] sm:$0xff]   ;;  %p1541_p9 = scmp.ne.s32.totalorder %s2000_s20, %s1540_s9  ;;  %s1710_s15 = smov [#allocation11]  }
  0x75   : > { %1268 = vmatpush3.bf16.msra.mxu1 %v1417_v31  ;;  %1257 = vmatprep.subr.bf16.mxu0 %v1418_v32  ;;  %s1544_s26 = sshll.u32 %s1710_s15, 4  ;;  %s1545_s26 = int_to_ptr.vmem [resolvable:$false] %s1544_s26 }
  0x76   : > { %1269 = vmatprep.subr.bf16.mxu1 %v1419_v33  ;;  %p1542_p12 = pnand %p1541_p9, %p1888_p0  ;;  %s1546_s25 = scalar_lea.vmem %s1545_s26, 512 }
  0x77   : > { %p1547_p4 = scmp.lt.s32.totalorder %s2000_s20, %s1545_s26  ;;  %p1548_p6 = scmp.lt.s32.totalorder %s1546_s25, %s1540_s9 }
  0x78   : > { %1258 = vmatpush3.bf16.msra.mxu0 %v1418_v32  ;;  %s2012_s28 = scalar_lea.hbm %s2198_s29, %s1996_s14  ;;  %p1543_p2 = pneg %p1542_p12 }
  0x79   : > { %1270 = vmatpush3.bf16.msra.mxu1 %v1419_v33  ;;  %1259 = vmatprep.subr.bf16.mxu0 %v1420_v34  ;;  %s2018_s17 = scalar_lea.hbm %s2199_s16, %s1996_s14  ;;  %p1549_p11 = por %p1548_p6, %p1547_p4 }
  0x7a   : > { %1271 = vmatprep.subr.bf16.mxu1 %v1421_v35 }
  0x7b   : > { %p1550_p13 = pnand %p1549_p11, %p1543_p2 }
  0x7c   : > { %1260 = vmatpush3.bf16.msra.mxu0 %v1420_v34 }
  0x7d   : > { %1272 = vmatpush3.bf16.msra.mxu1 %v1421_v35  ;;  %1277 = vmatprep.subr.bf16.mxu0 %v1422_v36 }
  0xf7   : > { %v503_v8 = vpop.xlane.xlu0 %502  ;;  %v509_v9 = vpop.xlane.xlu1 %508 }
  0xf8   : > { %v514_v10 = vmul.f32 0.015625, %v503_v8  ;;  %v516_v11 = vmul.f32 0.015625, %v509_v9  ;;  %v1176_v8 = vld [vmem:[%s2149_s6] ss:$0 sm:$0xff] }
  0xf9   : > { %v1183_v9 = vld [vmem:[%s2196_s4] ss:$0 sm:$0xff]  ;;  %s2023_s4 = scalar_lea.sflag [#allocation12], %s912_s21 }
  0xfa   : > { %v1945_v12 = vsub.f32 %v494_v0, %v514_v10  ;;  %v1947_v13 = vsub.f32 %v496_v1, %v516_v11 }
  0xfb   : > { %v506_v14 = vpop.xlane.xlu0 %505  ;;  %v512_v15 = vpop.xlane.xlu1 %511 }
  0xfc   : > { %v515_v16 = vmul.f32 0.015625, %v506_v14  ;;  %v517_v17 = vmul.f32 0.015625, %v512_v15  ;;  %v522_v18 = vmul.f32 %v1945_v12, %v1945_v12  ;;  %v524_v19 = vmul.f32 %v1947_v13, %v1947_v13 }
  0xfe   : > { %v519_v20 = vsub.f32 %v495_v2, %v515_v16  ;;  %v1953_v21 = vsub.f32 %v497_v5, %v517_v17  ;;  %v526_v22 = vsel %vm500_vm0, %v522_v18, 0.0  ;;  %v532_v23 = vsel %vm500_vm0, %v524_v19, 0.0  ;;  %v1423_v5 = vld [vmem:[#allocation8 + $0x10] sm:$0xff]  }
  0xff   : > { %527 = vadd.xlane.f32.xlu0 %v526_v22 }
 0x100   : > { %v523_v24 = vmul.f32 %v519_v20, %v519_v20  ;;  %v525_v25 = vmul.f32 %v1953_v21, %v1953_v21 }
 0x102   : > { %v529_v26 = vsel %vm500_vm0, %v523_v24, 0.0  ;;  %v535_v27 = vsel %vm500_vm0, %v525_v25, 0.0 }
 0x103   : > { %533 = vadd.xlane.f32.xlu0 %v532_v23  ;;  %530 = vadd.xlane.f32.xlu1 %v529_v26 }
 0x107   : > { %536 = vadd.xlane.f32.xlu1 %v535_v27 }
 0x188   : > { %v528_v37 = vpop.xlane.xlu0 %527 }
 0x189   : > { %v538_v38 = vmul.f32 0.015625, %v528_v37 }
 0x18b   : > { %v542_v39 = vadd.f32 1e-05, %v538_v38 }
 0x18c   : > { %v531_v40 = vpop.xlane.xlu1 %530  ;;  %v534_v41 = vpop.xlane.xlu0 %533 }
 0x18d   : > { %1426 = vrsqrt.f32 %v542_v39  ;;  %v539_v42 = vmul.f32 0.015625, %v531_v40  ;;  %v540_v43 = vmul.f32 0.015625, %v534_v41 }
 0x18f   : > { %v543_v44 = vadd.f32 1e-05, %v539_v42  ;;  %v544_v45 = vadd.f32 1e-05, %v540_v43 }
 0x190   : > { %v537_v46 = vpop.xlane.xlu1 %536 }
 0x191   : > { %1428 = vrsqrt.f32 %v543_v44  ;;  %v541_v47 = vmul.f32 0.015625, %v537_v46 }
 0x192   : > { %1430 = vrsqrt.f32 %v544_v45 }
 0x193   : > { %v545_v48 = vadd.f32 1e-05, %v541_v47 }
 0x195   : > { %1432 = vrsqrt.f32 %v545_v48 }
 0x19a   : > { %v1427_v49 = vpop.eup %1426 }
 0x19b   : > { %v550_v50 = vmul.f32 %v1427_v49, %v1945_v12 }
 0x19d   : > { %v560_v55 = vmul.f32 %v1174_v51, %v550_v50 }
 0x19e   : > { %v1429_v52 = vpop.eup %1428 }
 0x19f   : > { %v1431_v53 = vpop.eup %1430  ;;  %v551_v54 = vmul.f32 %v1429_v52, %v519_v20  ;;  %v570_v60 = vadd.f32 %v1175_v56, %v560_v55 }
 0x1a0   : > { %v552_v57 = vmul.f32 %v1431_v53, %v1947_v13 }
 0x1a1   : > { %v561_v58 = vmul.f32 %v1174_v51, %v551_v54 }
 0x1a2   : > { %v1433_v59 = vpop.eup %1432  ;;  %v562_v63 = vmul.f32 %v1174_v51, %v552_v57 }
 0x1a3   : > { %v571_v61 = vadd.f32 %v1175_v56, %v561_v58  ;;  %v553_v62 = vmul.f32 %v1433_v59, %v1953_v21 }
 0x1a4   : > { %v572_v2 = vadd.f32 %v1175_v56, %v562_v63 }
 0x1a5   : > { %v574_v0 = vpack.c.bf16 %v571_v61, %v570_v60  ;;  %v563_v1 = vmul.f32 %v1174_v51, %v553_v62 }
 0x1a7   : > { %1261 = vmatprep.mubr.msk.bf16.mxu0 %vm500_vm0, %v574_v0  ;;  %1273 = vmatprep.mubr.msk.bf16.mxu1 %vm500_vm0, %v574_v0  ;;  %v573_v3 = vadd.f32 %v1175_v56, %v563_v1 }
 0x1a9   : > { %v575_v4 = vpack.c.bf16 %v573_v3, %v572_v2 }
 0x1ab   : > { %1262 = vmatmul.mubr.msk.bf16.vlgmr.msra.gmra.mxu0 %vm500_vm0, %v575_v4  ;;  %1274 = vmatmul.mubr.msk.bf16.vlgmr.msra.gmra.mxu1 %vm500_vm0, %v575_v4 }
 0x1ac   : > { %1278 = vmatpush3.bf16.msra.mxu0 %v1422_v36  ;;  %1285 = vmatprep.mubr.msk.bf16.mxu0 %vm500_vm0, %v574_v0 }
 0x1ad   : > { %1279 = vmatprep.subr.bf16.mxu0 %v1423_v5 }
 0x1b0   : > { %1280 = vmatpush3.bf16.msra.mxu0 %v1423_v5 }
 0x1b1   : > { %1281 = vmatprep.subr.bf16.mxu0 %v1424_v6 }
 0x1b4   : > { %1282 = vmatpush3.bf16.msra.mxu0 %v1424_v6 }
 0x1b5   : > { %1283 = vmatprep.subr.bf16.mxu0 %v1425_v7 }
 0x1b8   : > { %1284 = vmatpush3.bf16.msra.mxu0 %v1425_v7 }
 0x1bb   : > { %1286 = vmatmul.mubr.msk.bf16.vlgmr.msra.gmra.mxu0 %vm500_vm0, %v575_v4 }
 0x26b   : > { %v1263_v10 = vpop.f32.mrf.mxu0  ;;  %v1275_v11 = vpop.f32.mrf.mxu1 }
 0x26c   : > { %v664_v12 = vadd.f32 %v1263_v10, %v1176_v8  ;;  %v752_v13 = vadd.f32 %v1275_v11, %v1183_v9 }
 0x26d   : > { %v655_v14 = vpop.f32.mrf.mxu0  ;;  %v743_v15 = vpop.f32.mrf.mxu1 }
 0x26e   : > { %v1225_v16 = vpack.c.bf16 %v664_v12, %v664_v12  ;;  %v1229_v17 = vpack.c.bf16 %v752_v13, %v752_v13  ;;  %v656_v18 = vadd.f32 %v1176_v8, %v655_v14  ;;  %v744_v19 = vadd.f32 %v1183_v9, %v743_v15 }
 0x26f   : > { %v1264_v20 = vpop.f32.mrf.mxu0  ;;  %v1276_v21 = vpop.f32.mrf.mxu1 }
 0x270   : > { %865 = vst.msk [vmem:[%s1988_s7 + $0x8] sm:$0xf] %vm862_vm1, %v1225_v16  ;;  %885 = vst.msk [vmem:[%s481_s30 + $0x8] sm:$0xf] %vm862_vm1, %v1229_v17  ;;  %v1223_v22 = vpack.c.bf16 %v656_v18, %v656_v18  ;;  %v1227_v23 = vpack.c.bf16 %v744_v19, %v744_v19  ;;  %v667_v24 = vadd.f32 %v1264_v20, %v1176_v8 }
 0x271   : > { %v755_v25 = vadd.f32 %v1276_v21, %v1183_v9  ;;  %v658_v26 = vpop.f32.mrf.mxu0  ;;  %v746_v27 = vpop.f32.mrf.mxu1 }
 0x272   : > { %863 = vst.msk [vmem:[%s1988_s7] sm:$0xf] %vm862_vm1, %v1223_v22  ;;  %883 = vst.msk [vmem:[%s481_s30] sm:$0xf] %vm862_vm1, %v1227_v23  ;;  %v1226_v28 = vpack.c.bf16 %v667_v24, %v667_v24  ;;  %v659_v30 = vadd.f32 %v1176_v8, %v658_v26  ;;  %v747_v31 = vadd.f32 %v1183_v9, %v746_v27 }
 0x273   : > { %v1230_v29 = vpack.c.bf16 %v755_v25, %v755_v25 }
 0x274   : > { %866 = vst.msk [vmem:[%s1988_s7 + $0xc] sm:$0xf] %vm862_vm1, %v1226_v28  ;;  %v1224_v32 = vpack.c.bf16 %v659_v30, %v659_v30  ;;  %v1228_v33 = vpack.c.bf16 %v747_v31, %v747_v31 }
 0x275   : > { %886 = vst.msk [vmem:[%s481_s30 + $0xc] sm:$0xf] %vm862_vm1, %v1230_v29 }
 0x276   : > { %864 = vst.msk [vmem:[%s1988_s7 + $0x4] sm:$0xf] %vm862_vm1, %v1224_v32  ;;  %884 = vst.msk [vmem:[%s481_s30 + $0x4] sm:$0xf] %vm862_vm1, %v1228_v33 }
 0x277   : > { %1553 = shalt.err (!%p1550_p13)
}
 0x278   : > { %s1554_s7 = scalar_lea.hbm %s2012_s28, 256  ;;  %s1558_s27 = scalar_lea.hbm %s2198_s29, 1024 }
 0x279   : > { %p1555_p3 = scmp.ne.s32.totalorder %s2012_s28, %s1554_s7  ;;  %p1559_p7 = scmp.lt.s32.totalorder %s2012_s28, %s2198_s29 }
 0x27a   : > { %p1560_p8 = scmp.lt.s32.totalorder %s1558_s27, %s1554_s7 }
 0x27b   : > { %p1556_p10 = pnand %p1555_p3, %p1888_p0 }
 0x27c   : > { %p1561_p1 = por %p1560_p8, %p1559_p7 }
 0x27d   : > { %p1557_p5 = pneg %p1556_p10 }
 0x27f   : > { %p1562_p9 = pnand %p1561_p1, %p1557_p5 }
 0x281   : > { %1565 = shalt.err (!%p1562_p9)
}
 0x282   : > { %s1711_s9 = smov 64   ;;  %s1712_s15 = smov 4  }
 0x283   : > { %1304 = dma.vmem_to_hbm [thread:$0]  (%p1888_p0), %s2000_s20, 256, %s2012_s28, %s2023_s4, %s1711_s9, %s1711_s9, %s1712_s15  }
 0x284   : > { %s908_s26 = scalar_lea.sflag [#allocation4], %s1925_s10  ;;  %s1566_s25 = scalar_lea.vmem %s1998_s22, 256 }
 0x285   : > { %p1567_p12 = scmp.ne.s32.totalorder %s1998_s22, %s1566_s25  ;;  %s1713_s7 = smov [#allocation10]  }
 0x286   : > { %s1570_s30 = sshll.u32 %s1713_s7, 4  ;;  %s1571_s30 = int_to_ptr.vmem [resolvable:$false] %s1570_s30 }
 0x287   : > { %p1568_p2 = pnand %p1567_p12, %p1888_p0  ;;  %s1572_s21 = scalar_lea.vmem %s1571_s30, 512 }
 0x288   : > { %p1573_p6 = scmp.lt.s32.totalorder %s1998_s22, %s1571_s30  ;;  %p1574_p11 = scmp.lt.s32.totalorder %s1572_s21, %s1566_s25 }
 0x289   : > { %p1569_p4 = pneg %p1568_p2 }
 0x28a   : > { %p1575_p13 = por %p1574_p11, %p1573_p6 }
 0x28c   : > { %p1576_p3 = pnand %p1575_p13, %p1569_p4 }
 0x28e   : > { %1579 = shalt.err (!%p1576_p3)
}
 0x28f   : > { %s1580_s20 = scalar_lea.hbm %s2018_s17, 256  ;;  %s1584_s27 = scalar_lea.hbm %s2199_s16, 1024 }
 0x290   : > { %p1581_p10 = scmp.ne.s32.totalorder %s2018_s17, %s1580_s20  ;;  %p1585_p8 = scmp.lt.s32.totalorder %s2018_s17, %s2199_s16 }
 0x291   : > { %p1586_p1 = scmp.lt.s32.totalorder %s1584_s27, %s1580_s20 }
 0x292   : > { %p1582_p5 = pnand %p1581_p10, %p1888_p0 }
 0x293   : > { %p1587_p9 = por %p1586_p1, %p1585_p8 }
 0x294   : > { %p1583_p7 = pneg %p1582_p5 }
 0x296   : > { %p1588_p12 = pnand %p1587_p9, %p1583_p7 }
 0x298   : > { %1591 = shalt.err (!%p1588_p12)
}
 0x299   : > { %1303 = dma.vmem_to_hbm [thread:$0]  (%p1888_p0), %s1998_s22, 256, %s2018_s17, %s908_s26, %s1711_s9, %s1711_s9, %s1712_s15   ;;  %v1287_v35 = vpop.f32.mrf.mxu0 }
 0x29a   : > { %s2200_s30 = sld [smem:[#allocation28_spill]]  ;;  %s488_s21 = scalar_lea.vmem [#allocation13], %s1983_s3 }
 0x29b   : > { %v831_v37 = vpop.f32.mrf.mxu0  ;;  %s969_s20 = sshll.u32 %s488_s21, 4  ;;  %s2201_s17 = sld [smem:[#allocation31_spill]]  ;;  %s2079_s20 = int_to_ptr.vmem [resolvable:$true] %s969_s20 }
 0x29c   : > { %s1592_s28 = scalar_lea.vmem %s2079_s20, 256  ;;  %s1714_s27 = smov [#allocation13]  }
 0x29d   : > { %v1288_v40 = vpop.f32.mrf.mxu0  ;;  %p1593_p2 = scmp.ne.s32.totalorder %s2079_s20, %s1592_s28  ;;  %s1596_s11 = sshll.u32 %s1714_s27, 4  ;;  %s1597_s11 = int_to_ptr.vmem [resolvable:$false] %s1596_s11 }
 0x29e   : > { %s1598_s12 = scalar_lea.vmem %s1597_s11, 512  ;;  %p1599_p11 = scmp.lt.s32.totalorder %s2079_s20, %s1597_s11 }
 0x29f   : > { %v834_v43 = vpop.f32.mrf.mxu0  ;;  %p1594_p4 = pnand %p1593_p2, %p1888_p0  ;;  %p1600_p13 = scmp.lt.s32.totalorder %s1598_s12, %s1592_s28 }
 0x2a0   : > { %v1190_v34 = vld [vmem:[%s2200_s30] ss:$0 sm:$0xff] }
 0x2a1   : > { %v840_v36 = vadd.f32 %v1287_v35, %v1190_v34  ;;  %v832_v39 = vadd.f32 %v1190_v34, %v831_v37  ;;  %v843_v42 = vadd.f32 %v1288_v40, %v1190_v34  ;;  %v835_v45 = vadd.f32 %v1190_v34, %v834_v43  ;;  %s2202_s26 = smov %s2201_s17  ;;  %s2086_s10 = scalar_lea.hbm %s2201_s17, %s1996_s14 }
 0x2a2   : > { %p1595_p6 = pneg %p1594_p4  ;;  %p1601_p3 = por %p1600_p13, %p1599_p11 }
 0x2a3   : > { %v1233_v38 = vpack.c.bf16 %v840_v36, %v840_v36  ;;  %v1231_v41 = vpack.c.bf16 %v832_v39, %v832_v39  ;;  %v1234_v44 = vpack.c.bf16 %v843_v42, %v843_v42  ;;  %v1232_v46 = vpack.c.bf16 %v835_v45, %v835_v45 }
 0x2a4   : > { %p1602_p10 = pnand %p1601_p3, %p1595_p6 }
 0x2a5   : > { %905 = vst.msk [vmem:[%s488_s21 + $0x8] sm:$0xf] %vm862_vm1, %v1233_v38  ;;  %903 = vst.msk [vmem:[%s488_s21] sm:$0xf] %vm862_vm1, %v1231_v41 }
 0x2a6   : > { %906 = vst.msk [vmem:[%s488_s21 + $0xc] sm:$0xf] %vm862_vm1, %v1234_v44  ;;  %904 = vst.msk [vmem:[%s488_s21 + $0x4] sm:$0xf] %vm862_vm1, %v1232_v46 }
 0x2a7   : > { %1605 = shalt.err (!%p1602_p10)
}
 0x2a8   : > { %s1606_s14 = scalar_lea.hbm %s2086_s10, 256  ;;  %s1610_s30 = scalar_lea.hbm %s2202_s26, 1024 }
 0x2a9   : > { %p1607_p5 = scmp.ne.s32.totalorder %s2086_s10, %s1606_s14  ;;  %p1611_p1 = scmp.lt.s32.totalorder %s2086_s10, %s2202_s26 }
 0x2aa   : > { %p1612_p9 = scmp.lt.s32.totalorder %s1610_s30, %s1606_s14 }
 0x2ab   : > { %p1608_p7 = pnand %p1607_p5, %p1888_p0 }
 0x2ac   : > { %p1613_p12 = por %p1612_p9, %p1611_p1 }
 0x2ad   : > { %p1609_p8 = pneg %p1608_p7 }
 0x2af   : > { %p1614_p2 = pnand %p1613_p12, %p1609_p8 }
 0x2b1   : > { %1617 = shalt.err (!%p1614_p2)
}
 0x2b2   : > { %1305 = dma.vmem_to_hbm [thread:$0]  (%p1888_p0), %s2079_s20, 256, %s2086_s10, %s2023_s4, %s1711_s9, %s1711_s9, %s1712_s15  }
 0x2b3 PF: > { %s2203_s22 = sld [smem:[#allocation19_spill]]  ;;  %p1340_p4 = scmp.ge.s32.totalorder %s1700_s24, 2 }
 0x2b4   : > { %s2204_s17 = sld [smem:[#allocation21_spill]] }
 0x2b9   : > { %s984_s28 = sand.u32 1, %s2203_s22  }
 0x2ba   : > { %p2205_p6 = scmp.ne.s32.totalorder %s2204_s17, 0  ;;  %s985_s27 = scalar_lea.sflag [#allocation4], %s984_s28 }
 0x2bc   : > { %p1324_p11 = pnand %p1340_p4, %p2205_p6 }
 0x2be   : > { %p1325_p13 = pneg %p1324_p11 }
 0x2c0   : > { %1663 = dma.done.wait (%p1325_p13), %s985_s27, 256  }
 0x2c1   : > { %1665 = vsyncadd (%p1325_p13), %s985_s27, 4294967040  ;;  %s2206_s5 = sadd.s32 4294967294, %s1700_s24  }
 0x2c2   : > { %s993_s11 = sand.u32 1, %s2206_s5  }
 0x2c3   : > { %s994_s12 = scalar_lea.sflag [#allocation12], %s993_s11 }
 0x2c4   : > { %1667 = dma.done.wait (%p1325_p13), %s994_s12, 512  }
 0x2c5   : > { %1669 = vsyncadd (%p1325_p13), %s994_s12, 4294966784  ;;  %s33_s24 = sadd.s32 1, %s1700_s24   ;;  %s2207_s20 = sld [smem:[#allocation20_spill]] }
 0x2c6   : > { %p30_p0 = scmp.ge.s32.totalorder %s33_s24, 6   ;;  %s2208_s22 = sld [smem:[#allocation22_spill]] }
 0x2c7   : > { %s2209_s17 = smov %s1676_s18  ;;  %s2210_s18 = smov %s1680_s19 }
 0x2c8   : > { %s2211_s19 = smov %s1905_s8  ;;  %s2212_s21 = smov %s1696_s23 }
 0x2c9   : > { %s2213_s23 = smov %s2219_s13  ;;  %32 = sbr.rel (!%p30_p0) target bundleno = 20 (0x14), region = 145 }
 0x2ce   :  { %1008 = vsyncpa [#allocation3], 1 }
 0x2cf   :  { %1010 = vsyncpa [#allocation3 + $0x1], 1 }
 0x2d0   :  { %1011 = vsyncpa [#allocation6], 1 }
 0x2d1   :  { %1012 = vsyncpa [#allocation9], 1 }
 0x2d2   :  { %1013 = vsyncpa [#allocation4], 1 }
 0x2d3   :  { %1015 = vsyncpa [#allocation4 + $0x1], 1 }
 0x2d4   :  { %1016 = vsyncpa [#allocation12], 1 }
 0x2d5   :  { %1018 = vsyncpa [#allocation12 + $0x1], 1 }

// kernel: tpu_custom_call.1
= control target key start
LH: loop header
LB: loop body
LE: loop exit
PB: predicated region body
PF: predicated region fallthrough
CT: control target
= control target key end

     0   :  { %s2143_s0 = inlined_call_operand.hbm [shape: f32[2,64,64], index: 0, kind: input, shape index: {}]   ;;  %s2144_s1 = inlined_call_operand.vmem [shape: f32[1,64], index: 1, kind: input, shape index: {}]   ;;  %s2145_s2 = inlined_call_operand.vmem [shape: f32[1,64], index: 2, kind: input, shape index: {}]   ;;  %s2146_s3 = inlined_call_operand.hbm [shape: bf16[64,64], index: 3, kind: input, shape index: {}]   ;;  %s2147_s4 = inlined_call_operand.hbm [shape: bf16[64,64], index: 4, kind: input, shape index: {}]   ;;  %s2148_s5 = inlined_call_operand.hbm [shape: bf16[64,64], index: 5, kind: input, shape index: {}]   ;;  %s2149_s6 = inlined_call_operand.vmem [shape: f32[1,64], index: 6, kind: input, shape index: {}]   ;;  %s2150_s7 = inlined_call_operand.vmem [shape: f32[1,64], index: 7, kind: input, shape index: {}]   ;;  %s2151_s8 = inlined_call_operand.vmem [shape: f32[1,64], index: 8, kind: input, shape index: {}]   ;;  %s2152_s9 = inlined_call_operand.hbm [shape: bf16[2,64,64], index: 9, kind: output, shape index: {0}]   ;;  %s2153_s10 = inlined_call_operand.hbm [shape: bf16[2,64,64], index: 10, kind: output, shape index: {1}]   ;;  %s2154_s11 = inlined_call_operand.hbm [shape: bf16[2,64,64], index: 11, kind: output, shape index: {2}]  }
   0x1   :  { %2167 = sst [smem:[#allocation24_spill]] %s2146_s3 }
   0x2   :  { %2168 = sst [smem:[#allocation25_spill]] %s2147_s4 }
   0x3   :  { %2169 = sst [smem:[#allocation26_spill]] %s2148_s5 }
   0x4   :  { %2170 = sst [smem:[#allocation27_spill]] %s2150_s7 }
   0x5   :  { %2171 = sst [smem:[#allocation28_spill]] %s2151_s8 }
   0x6   :  { %2172 = sst [smem:[#allocation29_spill]] %s2152_s9 }
   0x7   :  { %2173 = sst [smem:[#allocation30_spill]] %s2153_s10 }
   0x8   :  { %2174 = sst [smem:[#allocation31_spill]] %s2154_s11 }
   0x9   :  { %17 = vsyncpa [#allocation3], 0 }
   0xa   :  { %19 = vsyncpa [#allocation3 + $0x1], 0 }
   0xb   :  { %20 = vsyncpa [#allocation6], 0 }
   0xc   :  { %21 = vsyncpa [#allocation9], 0 }
   0xd   :  { %22 = vsyncpa [#allocation4], 0 }
   0xe   :  { %24 = vsyncpa [#allocation4 + $0x1], 0 }
   0xf   :  { %25 = vsyncpa [#allocation12], 0 }
  0x10   :  { %27 = vsyncpa [#allocation12 + $0x1], 0  ;;  %s1775_s17 = smov 0   ;;  %s1777_s18 = smov 0  }
  0x11   :  { %s1779_s19 = smov 0   ;;  %s1781_s20 = smov 0  }
  0x12   :  { %s1783_s21 = smov 0   ;;  %s1785_s22 = smov 0  }
  0x13   :  { %s1787_s23 = smov 0   ;;  %s1789_s24 = smov 0  }
  0x14 LB: > { %2175 = sst [smem:[#allocation19_spill]] %s1672_s17  ;;  %s1816_s25 = sadd.s32 4294967295, %s1700_s24   ;;  %s1700_s24 = sphi %s1789_s24, %s33_s24   ;;  %s1696_s23 = sphi %s1787_s23, %s2213_s23   ;;  %s1692_s22 = sphi %s1785_s22, %s2208_s22   ;;  %s1688_s21 = sphi %s1783_s21, %s2212_s21   ;;  %s1684_s20 = sphi %s1781_s20, %s2207_s20   ;;  %s1680_s19 = sphi %s1779_s19, %s2211_s19   ;;  %s1676_s18 = sphi %s1777_s18, %s2210_s18   ;;  %s1672_s17 = sphi %s1775_s17, %s2209_s17  }
  0x15   : > { %2176 = sst [smem:[#allocation20_spill]] %s1692_s22  ;;  %s2155_s26 = sadd.s32 4294967294, %s1700_s24  }
  0x16   : > { %p67_p0 = scmp.ne.s32.totalorder %s1676_s18, %s1672_s17  ;;  %p2159_p1 = scmp.eq.s32.totalorder %s1816_s25, 0 }
  0x17   : > { %p267_p3 = scmp.eq.s32.totalorder %s2155_s26, 3  ;;  %p1157_p5 = scmp.ge.s32.totalorder %s1700_s24, 1 }
  0x18   : > { %p1827_p4 = por %p2159_p1, %p67_p0  ;;  %p330_p7 = scmp.lt.s32.totalorder %s1700_s24, 5 }
  0x19   : > { %p1832_p6 = por %p267_p3, %p67_p0  ;;  %s1702_s30 = smov [#allocation5]  }
  0x1a   : > { %s2177_s27 = scalar_select %p1827_p4, 1, 0 }
  0x1b   : > { %s2178_s28 = scalar_select %p1832_p6, 1, 0 }
  0x1c   : > { %p1837_p8 = pnand %p1157_p5, %p330_p7  ;;  %s348_s12 = sshll.u32 %s1702_s30, 4  ;;  %s349_s12 = int_to_ptr.vmem [resolvable:$true] %s348_s12 }
  0x1d   : > { %2179 = sst [smem:[#allocation21_spill]] %s2178_s28  ;;  %s1703_s14 = smov [#allocation7]  }
  0x1e   : > { %p1309_p9 = pneg %p1837_p8  ;;  %s361_s15 = sshll.u32 %s1703_s14, 4  ;;  %s362_s15 = int_to_ptr.vmem [resolvable:$true] %s361_s15 }
  0x1f   : > { %s1704_s16 = smov [#allocation8]   ;;  %s1445_s28 = scalar_lea.vmem %s349_s12, 512 }
  0x20   : > { %p1845_p10 = pnand %p1309_p9, %p2159_p1  ;;  %s374_s26 = sshll.u32 %s1704_s16, 4  ;;  %s375_s26 = int_to_ptr.vmem [resolvable:$true] %s374_s26 }
  0x21   : > { %p1446_p12 = scmp.ne.s32.totalorder %s349_s12, %s1445_s28  ;;  %p1453_p3 = scmp.lt.s32.totalorder %s349_s12, %s349_s12 }
  0x22   : > { %p1436_p11 = pneg %p1845_p10  ;;  %p1454_p5 = scmp.lt.s32.totalorder %s1445_s28, %s1445_s28 }
  0x24   : > { %p1448_p13 = pnand %p1446_p12, %p1436_p11  ;;  %p1455_p7 = por %p1454_p5, %p1453_p3 }
  0x26   : > { %p1449_p0 = pneg %p1448_p13 }
  0x28   : > { %p1456_p9 = pnand %p1455_p7, %p1449_p0 }
  0x2a   : > { %1459 = shalt.err (!%p1456_p9)
}
  0x2b   : > { %s1705_s30 = smov 64   ;;  %s1706_s14 = smov 4  }
  0x2c   : > { %s2182_s3 = sld [smem:[#allocation24_spill]]  ;;  %s1471_s11 = scalar_lea.vmem %s362_s15, 512 }
  0x2d   : > { %p1472_p1 = scmp.ne.s32.totalorder %s362_s15, %s1471_s11  ;;  %p1479_p2 = scmp.lt.s32.totalorder %s362_s15, %s362_s15 }
  0x2e   : > { %p1480_p6 = scmp.lt.s32.totalorder %s1471_s11, %s1471_s11 }
  0x2f   : > { %p1474_p12 = pnand %p1472_p1, %p1436_p11 }
  0x30   : > { %p1481_p3 = por %p1480_p6, %p1479_p2 }
  0x31   : > { %p1475_p13 = pneg %p1474_p12 }
  0x32   : > { %1312 = dma.hbm_to_vmem [thread:$0]  (!%p1845_p10), %s2182_s3, 512, %s349_s12, [#allocation6], %s1705_s30, %s1705_s30, %s1706_s14  }
  0x33   : > { %p1482_p0 = pnand %p1481_p3, %p1475_p13 }
  0x35   : > { %1485 = shalt.err (!%p1482_p0)
}
  0x36   : > { %s2183_s4 = sld [smem:[#allocation25_spill]]  ;;  %s1497_s17 = scalar_lea.vmem %s375_s26, 512 }
  0x37   : > { %p1498_p5 = scmp.ne.s32.totalorder %s375_s26, %s1497_s17  ;;  %p1505_p9 = scmp.lt.s32.totalorder %s375_s26, %s375_s26 }
  0x38   : > { %p1506_p12 = scmp.lt.s32.totalorder %s1497_s17, %s1497_s17 }
  0x39   : > { %p1500_p7 = pnand %p1498_p5, %p1436_p11 }
  0x3a   : > { %p1507_p4 = por %p1506_p12, %p1505_p9 }
  0x3b   : > { %p1501_p1 = pneg %p1500_p7 }
  0x3c   : > { %1315 = dma.hbm_to_vmem [thread:$0]  (!%p1845_p10), %s2183_s4, 512, %s362_s15, [#allocation6], %s1705_s30, %s1705_s30, %s1706_s14  }
  0x3d   : > { %p1508_p2 = pnand %p1507_p4, %p1501_p1 }
  0x3f   : > { %1511 = shalt.err (!%p1508_p2)
}
  0x40   : > { %s2184_s5 = sld [smem:[#allocation26_spill]]  ;;  %s42_s8 = sadd.s32 1, %s1692_s22 }
  0x41   : > { %p43_p4 = scmp.ge.s32.totalorder %s42_s8, 2  ;;  %s45_s13 = sadd.s32 1, %s1696_s23 }
  0x42   : > { %s54_s15 = sadd.s32 1, %s1680_s19  ;;  %p61_p6 = scmp.ne.s32.totalorder %s1680_s19, %s1676_s18 }
  0x43   : > { %s2215_s8 = smov (%p43_p4, %s42_s8), 0  ;;  %s2217_s13 = smov (!%p43_p4, %s45_s13), %s1696_s23 }
  0x44   : > { %2185 = sst [smem:[#allocation22_spill]] %s2215_s8  ;;  %s50_s16 = ssub.s32 %s1692_s22, %s2215_s8 }
  0x45   : > { %p62_p11 = scmp.eq.s32.totalorder %s1700_s24, 0  ;;  %p47_p13 = scmp.ge.s32.totalorder %s2217_s13, 2 }
  0x46   : > { %1318 = dma.hbm_to_vmem [thread:$0]  (!%p1845_p10), %s2184_s5, 512, %s375_s26, [#allocation9], %s1705_s30, %s1705_s30, %s1706_s14  }
  0x47   : > { %p2186_p3 = scmp.eq.s32.totalorder %s1816_s25, 3  ;;  %p1892_p10 = por %p62_p11, %p61_p6 }
  0x48   : > { %p1336_p5 = scmp.lt.s32.totalorder %s1700_s24, 4  ;;  %s2219_s13 = smov (%p47_p13, %s2217_s13), 0 }
  0x49   : > { %p1888_p0 = por %p2186_p3, %p61_p6  ;;  %s397_s30 = sand.u32 1, %s1680_s19  }
  0x4a   : > { %s1163_s14 = sshll.u32 %s1692_s22, 2  ;;  %s49_s17 = ssub.s32 %s1696_s23, %s2219_s13 }
  0x4b   : > { %s2187_s28 = scalar_select %p1888_p0, 1, 0 }
  0x4c   : > { %s51_s11 = sor.u32 %s50_s16, %s49_s17  ;;  %s1162_s12 = sshll.u32 %s397_s30, 5 }
  0x4d   : > { %2188 = sst [smem:[#allocation23_spill]] %s2187_s28  ;;  %p52_p7 = scmp.eq.s32.totalorder %s51_s11, 0 }
  0x4e   : > { %s1164_s3 = sshll.u32 %s1696_s23, 3  ;;  %s401_s4 = scalar_lea.vmem [#allocation2], %s1162_s12 }
  0x4f   : > { %s410_s5 = sshll.u32 %s401_s4, 4  ;;  %s407_s9 = sadd.s32 %s1164_s3, %s1163_s14  ;;  %s411_s5 = int_to_ptr.vmem [resolvable:$true] %s410_s5 }
  0x50   : > { %s1905_s8 = scalar_select %p52_p7, %s1680_s19, %s54_s15  }
  0x51   : > { %s1165_s10 = sshll.u32 %s407_s9, 7  ;;  %p1911_p1 = pnand %p1336_p5, %p1892_p10 }
  0x52   : > { %s409_s16 = scalar_lea.hbm %s2143_s0, %s1165_s10  ;;  %s398_s17 = scalar_lea.sflag [#allocation3], %s397_s30 }
  0x53   : > { %p1514_p9 = pneg %p1911_p1  ;;  %s1525_s4 = scalar_lea.vmem %s411_s5, 512 }
  0x54   : > { %p1526_p12 = scmp.ne.s32.totalorder %s411_s5, %s1525_s4  ;;  %s1707_s3 = smov [#allocation2]  }
  0x55   : > { %s1530_s9 = sshll.u32 %s1707_s3, 4  ;;  %s1531_s9 = int_to_ptr.vmem [resolvable:$false] %s1530_s9 }
  0x56   : > { %p1528_p2 = pnand %p1526_p12, %p1514_p9  ;;  %s1532_s15 = scalar_lea.vmem %s1531_s9, 1024 }
  0x57   : > { %p1533_p6 = scmp.lt.s32.totalorder %s411_s5, %s1531_s9  ;;  %p1534_p11 = scmp.lt.s32.totalorder %s1532_s15, %s1525_s4 }
  0x58   : > { %p1529_p4 = pneg %p1528_p2 }
  0x59   : > { %p1535_p13 = por %p1534_p11, %p1533_p6 }
  0x5b   : > { %p1536_p3 = pnand %p1535_p13, %p1529_p4 }
  0x5d   : > { %1539 = shalt.err (!%p1536_p3)
}
  0x5e   : > { %s1708_s26 = smov 128   ;;  %s1709_s7 = smov 8  }
  0x5f   : > { %1322 = dma.hbm_to_vmem [thread:$0]  (!%p1911_p1), %s409_s16, 512, %s411_s5, %s398_s17, %s1708_s26, %s1708_s26, %s1709_s7  }
  0x60   : > { %422 = sbr.rel (%p1837_p8) target bundleno = 691 (0x2b3), region = 56  ;;  %s1925_s10 = sand.u32 (!%p1837_p8), 1, %s1676_s18  }
  0x61   : > { %s1167_s22 = sshll.u32 (!%p1837_p8), %s1925_s10, 5  ;;  %s425_s30 = scalar_lea.sflag (!%p1837_p8), [#allocation3], %s1925_s10 }
  0x62   : > { %s428_s14 = scalar_lea.vmem (!%p1837_p8), [#allocation2], %s1167_s22  ;;  %p2191_p10 = scmp.ne.s32.totalorder (!%p1837_p8), %s2177_s27, 0 }
  0x65   : > { %1651 = dma.done.wait (%p2191_p10), %s425_s30, 512  }
  0x66   : > { %1653 = vsyncadd (%p2191_p10), %s425_s30, 4294966784  ;;  %p2192_p5 = scmp.eq.s32.totalorder %s1816_s25, 0 }
  0x68   : > { %1655 = dma.done.wait (%p2192_p5), [#allocation6], 1024   ;;  %p2193_p7 = pmov %p2192_p5 }
  0x69   : > { %p2194_p8 = pmov %p2192_p5 }
  0x6a   : > { %1657 = vsyncadd (%p2193_p7), [#allocation6], 4294966272 }
  0x6b   : > { %1659 = dma.done.wait (%p2194_p8), [#allocation9], 512   ;;  %p2195_p1 = pmov %p2192_p5 }
  0x6c   : > { %vm500_vm0 = vcmask 523264   ;;  %v494_v0 = vld [vmem:[%s428_s14] sm:$0xff]  ;;  %v496_v1 = vld [vmem:[%s428_s14 + $0x10] sm:$0xff]  ;;  %v495_v2 = vld [vmem:[%s428_s14 + $0x8] sm:$0xff]  ;;  %s2196_s4 = sld [smem:[#allocation27_spill]]  ;;  %s1983_s3 = sshll.u32 %s1925_s10, 4 }
  0x6d   : > { %1661 = vsyncadd (%p2195_p1), [#allocation9], 4294966784  ;;  %v501_v3 = vsel %vm500_vm0, %v494_v0, 0.0  ;;  %v507_v4 = vsel %vm500_vm0, %v496_v1, 0.0  ;;  %v497_v5 = vld [vmem:[%s428_s14 + $0x18] sm:$0xff]  ;;  %v504_v6 = vsel %vm500_vm0, %v495_v2, 0.0 }
  0x6e   : > { %502 = vadd.xlane.f32.xlu0 %v501_v3  ;;  %508 = vadd.xlane.f32.xlu1 %v507_v4  ;;  %v510_v7 = vsel %vm500_vm0, %v497_v5, 0.0  ;;  %v1414_v28 = vld [vmem:[#allocation5 + $0x18] sm:$0xff]   ;;  %v1416_v30 = vld [vmem:[#allocation5 + $0x10] sm:$0xff]   ;;  %v1418_v32 = vld [vmem:[#allocation5 + $0x8] sm:$0xff]   ;;  %s1212_s9 = sshll.u32 %s1684_s20, 2  ;;  %s1213_s15 = sshll.u32 %s1688_s21, 3 }
  0x6f   : > { %v1415_v29 = vld [vmem:[#allocation7 + $0x18] sm:$0xff]   ;;  %v1417_v31 = vld [vmem:[#allocation7 + $0x10] sm:$0xff]   ;;  %1253 = vmatprep.subr.bf16.mxu0 %v1414_v28  ;;  %v1419_v33 = vld [vmem:[#allocation7 + $0x8] sm:$0xff]   ;;  %vm862_vm1 = vcmask 519168   ;;  %s930_s26 = sadd.s32 %s1213_s15, %s1212_s9  ;;  %s1988_s7 = scalar_lea.vmem [#allocation10], %s1983_s3 }
  0x70   : > { %1265 = vmatprep.subr.bf16.mxu1 %v1415_v29  ;;  %1254 = vmatpush3.bf16.msra.mxu0 %v1414_v28  ;;  %v1420_v34 = vld [vmem:[#allocation5] sm:$0xff]   ;;  %v1422_v36 = vld [vmem:[#allocation8 + $0x18] sm:$0xff]   ;;  %s933_s22 = sshll.u32 %s1988_s7, 4  ;;  %s481_s30 = scalar_lea.vmem [#allocation11], %s1983_s3  ;;  %s1998_s22 = int_to_ptr.vmem [resolvable:$true] %s933_s22 }
  0x71   : > { %1266 = vmatpush3.bf16.msra.mxu1 %v1415_v29  ;;  %1255 = vmatprep.subr.bf16.mxu0 %v1416_v30  ;;  %v1421_v35 = vld [vmem:[#allocation7] sm:$0xff]   ;;  %s951_s20 = sshll.u32 %s481_s30, 4  ;;  %s912_s21 = sand.u32 1, %s1816_s25   ;;  %s2000_s20 = int_to_ptr.vmem [resolvable:$true] %s951_s20 }
  0x72   : > { %505 = vadd.xlane.f32.xlu0 %v504_v6  ;;  %511 = vadd.xlane.f32.xlu1 %v510_v7  ;;  %v1174_v51 = vld [vmem:[%s2144_s1] ss:$0 sm:$0xff]  ;;  %v1424_v6 = vld [vmem:[#allocation8 + $0x8] sm:$0xff]   ;;  %s1996_s14 = sshll.u32 %s930_s26, 6  ;;  %s2198_s29 = sld [smem:[#allocation30_spill]] }
  0x73   : > { %1267 = vmatprep.subr.bf16.mxu1 %v1417_v31  ;;  %v1175_v56 = vld [vmem:[%s2145_s2] ss:$0 sm:$0xff]  ;;  %s2199_s16 = sld [smem:[#allocation29_spill]]  ;;  %s1540_s9 = scalar_lea.vmem %s2000_s20, 256 }
  0x74   : > { %1256 = vmatpush3.bf16.msra.mxu0 %v1416_v30  ;;  %v1425_v7 = vld [vmem:[#allocation8] sm:$0xff]   ;;  %p1541_p9 = scmp.ne.s32.totalorder %s2000_s20, %s1540_s9  ;;  %s1710_s15 = smov [#allocation11]  }
  0x75   : > { %1268 = vmatpush3.bf16.msra.mxu1 %v1417_v31  ;;  %1257 = vmatprep.subr.bf16.mxu0 %v1418_v32  ;;  %s1544_s26 = sshll.u32 %s1710_s15, 4  ;;  %s1545_s26 = int_to_ptr.vmem [resolvable:$false] %s1544_s26 }
  0x76   : > { %1269 = vmatprep.subr.bf16.mxu1 %v1419_v33  ;;  %p1542_p12 = pnand %p1541_p9, %p1888_p0  ;;  %s1546_s25 = scalar_lea.vmem %s1545_s26, 512 }
  0x77   : > { %p1547_p4 = scmp.lt.s32.totalorder %s2000_s20, %s1545_s26  ;;  %p1548_p6 = scmp.lt.s32.totalorder %s1546_s25, %s1540_s9 }
  0x78   : > { %1258 = vmatpush3.bf16.msra.mxu0 %v1418_v32  ;;  %s2012_s28 = scalar_lea.hbm %s2198_s29, %s1996_s14  ;;  %p1543_p2 = pneg %p1542_p12 }
  0x79   : > { %1270 = vmatpush3.bf16.msra.mxu1 %v1419_v33  ;;  %1259 = vmatprep.subr.bf16.mxu0 %v1420_v34  ;;  %s2018_s17 = scalar_lea.hbm %s2199_s16, %s1996_s14  ;;  %p1549_p11 = por %p1548_p6, %p1547_p4 }
  0x7a   : > { %1271 = vmatprep.subr.bf16.mxu1 %v1421_v35 }
  0x7b   : > { %p1550_p13 = pnand %p1549_p11, %p1543_p2 }
  0x7c   : > { %1260 = vmatpush3.bf16.msra.mxu0 %v1420_v34 }
  0x7d   : > { %1272 = vmatpush3.bf16.msra.mxu1 %v1421_v35  ;;  %1277 = vmatprep.subr.bf16.mxu0 %v1422_v36 }
  0xf7   : > { %v503_v8 = vpop.xlane.xlu0 %502  ;;  %v509_v9 = vpop.xlane.xlu1 %508 }
  0xf8   : > { %v514_v10 = vmul.f32 0.015625, %v503_v8  ;;  %v516_v11 = vmul.f32 0.015625, %v509_v9  ;;  %v1176_v8 = vld [vmem:[%s2149_s6] ss:$0 sm:$0xff] }
  0xf9   : > { %v1183_v9 = vld [vmem:[%s2196_s4] ss:$0 sm:$0xff]  ;;  %s2023_s4 = scalar_lea.sflag [#allocation12], %s912_s21 }
  0xfa   : > { %v1945_v12 = vsub.f32 %v494_v0, %v514_v10  ;;  %v1947_v13 = vsub.f32 %v496_v1, %v516_v11 }
  0xfb   : > { %v506_v14 = vpop.xlane.xlu0 %505  ;;  %v512_v15 = vpop.xlane.xlu1 %511 }
  0xfc   : > { %v515_v16 = vmul.f32 0.015625, %v506_v14  ;;  %v517_v17 = vmul.f32 0.015625, %v512_v15  ;;  %v522_v18 = vmul.f32 %v1945_v12, %v1945_v12  ;;  %v524_v19 = vmul.f32 %v1947_v13, %v1947_v13 }
  0xfe   : > { %v519_v20 = vsub.f32 %v495_v2, %v515_v16  ;;  %v1953_v21 = vsub.f32 %v497_v5, %v517_v17  ;;  %v526_v22 = vsel %vm500_vm0, %v522_v18, 0.0  ;;  %v532_v23 = vsel %vm500_vm0, %v524_v19, 0.0  ;;  %v1423_v5 = vld [vmem:[#allocation8 + $0x10] sm:$0xff]  }
  0xff   : > { %527 = vadd.xlane.f32.xlu0 %v526_v22 }
 0x100   : > { %v523_v24 = vmul.f32 %v519_v20, %v519_v20  ;;  %v525_v25 = vmul.f32 %v1953_v21, %v1953_v21 }
 0x102   : > { %v529_v26 = vsel %vm500_vm0, %v523_v24, 0.0  ;;  %v535_v27 = vsel %vm500_vm0, %v525_v25, 0.0 }
 0x103   : > { %533 = vadd.xlane.f32.xlu0 %v532_v23  ;;  %530 = vadd.xlane.f32.xlu1 %v529_v26 }
 0x107   : > { %536 = vadd.xlane.f32.xlu1 %v535_v27 }
 0x188   : > { %v528_v37 = vpop.xlane.xlu0 %527 }
 0x189   : > { %v538_v38 = vmul.f32 0.015625, %v528_v37 }
 0x18b   : > { %v542_v39 = vadd.f32 1e-05, %v538_v38 }
 0x18c   : > { %v531_v40 = vpop.xlane.xlu1 %530  ;;  %v534_v41 = vpop.xlane.xlu0 %533 }
 0x18d   : > { %1426 = vrsqrt.f32 %v542_v39  ;;  %v539_v42 = vmul.f32 0.015625, %v531_v40  ;;  %v540_v43 = vmul.f32 0.015625, %v534_v41 }
 0x18f   : > { %v543_v44 = vadd.f32 1e-05, %v539_v42  ;;  %v544_v45 = vadd.f32 1e-05, %v540_v43 }
 0x190   : > { %v537_v46 = vpop.xlane.xlu1 %536 }
 0x191   : > { %1428 = vrsqrt.f32 %v543_v44  ;;  %v541_v47 = vmul.f32 0.015625, %v537_v46 }
 0x192   : > { %1430 = vrsqrt.f32 %v544_v45 }
 0x193   : > { %v545_v48 = vadd.f32 1e-05, %v541_v47 }
 0x195   : > { %1432 = vrsqrt.f32 %v545_v48 }
 0x19a   : > { %v1427_v49 = vpop.eup %1426 }
 0x19b   : > { %v550_v50 = vmul.f32 %v1427_v49, %v1945_v12 }
 0x19d   : > { %v560_v55 = vmul.f32 %v1174_v51, %v550_v50 }
 0x19e   : > { %v1429_v52 = vpop.eup %1428 }
 0x19f   : > { %v1431_v53 = vpop.eup %1430  ;;  %v551_v54 = vmul.f32 %v1429_v52, %v519_v20  ;;  %v570_v60 = vadd.f32 %v1175_v56, %v560_v55 }
 0x1a0   : > { %v552_v57 = vmul.f32 %v1431_v53, %v1947_v13 }
 0x1a1   : > { %v561_v58 = vmul.f32 %v1174_v51, %v551_v54 }
 0x1a2   : > { %v1433_v59 = vpop.eup %1432  ;;  %v562_v63 = vmul.f32 %v1174_v51, %v552_v57 }
 0x1a3   : > { %v571_v61 = vadd.f32 %v1175_v56, %v561_v58  ;;  %v553_v62 = vmul.f32 %v1433_v59, %v1953_v21 }
 0x1a4   : > { %v572_v2 = vadd.f32 %v1175_v56, %v562_v63 }
 0x1a5   : > { %v574_v0 = vpack.c.bf16 %v571_v61, %v570_v60  ;;  %v563_v1 = vmul.f32 %v1174_v51, %v553_v62 }
 0x1a7   : > { %1261 = vmatprep.mubr.msk.bf16.mxu0 %vm500_vm0, %v574_v0  ;;  %1273 = vmatprep.mubr.msk.bf16.mxu1 %vm500_vm0, %v574_v0  ;;  %v573_v3 = vadd.f32 %v1175_v56, %v563_v1 }
 0x1a9   : > { %v575_v4 = vpack.c.bf16 %v573_v3, %v572_v2 }
 0x1ab   : > { %1262 = vmatmul.mubr.msk.bf16.vlgmr.msra.gmra.mxu0 %vm500_vm0, %v575_v4  ;;  %1274 = vmatmul.mubr.msk.bf16.vlgmr.msra.gmra.mxu1 %vm500_vm0, %v575_v4 }
 0x1ac   : > { %1278 = vmatpush3.bf16.msra.mxu0 %v1422_v36  ;;  %1285 = vmatprep.mubr.msk.bf16.mxu0 %vm500_vm0, %v574_v0 }
 0x1ad   : > { %1279 = vmatprep.subr.bf16.mxu0 %v1423_v5 }
 0x1b0   : > { %1280 = vmatpush3.bf16.msra.mxu0 %v1423_v5 }
 0x1b1   : > { %1281 = vmatprep.subr.bf16.mxu0 %v1424_v6 }
 0x1b4   : > { %1282 = vmatpush3.bf16.msra.mxu0 %v1424_v6 }
 0x1b5   : > { %1283 = vmatprep.subr.bf16.mxu0 %v1425_v7 }
 0x1b8   : > { %1284 = vmatpush3.bf16.msra.mxu0 %v1425_v7 }
 0x1bb   : > { %1286 = vmatmul.mubr.msk.bf16.vlgmr.msra.gmra.mxu0 %vm500_vm0, %v575_v4 }
 0x26b   : > { %v1263_v10 = vpop.f32.mrf.mxu0  ;;  %v1275_v11 = vpop.f32.mrf.mxu1 }
 0x26c   : > { %v664_v12 = vadd.f32 %v1263_v10, %v1176_v8  ;;  %v752_v13 = vadd.f32 %v1275_v11, %v1183_v9 }
 0x26d   : > { %v655_v14 = vpop.f32.mrf.mxu0  ;;  %v743_v15 = vpop.f32.mrf.mxu1 }
 0x26e   : > { %v1225_v16 = vpack.c.bf16 %v664_v12, %v664_v12  ;;  %v1229_v17 = vpack.c.bf16 %v752_v13, %v752_v13  ;;  %v656_v18 = vadd.f32 %v1176_v8, %v655_v14  ;;  %v744_v19 = vadd.f32 %v1183_v9, %v743_v15 }
 0x26f   : > { %v1264_v20 = vpop.f32.mrf.mxu0  ;;  %v1276_v21 = vpop.f32.mrf.mxu1 }
 0x270   : > { %865 = vst.msk [vmem:[%s1988_s7 + $0x8] sm:$0xf] %vm862_vm1, %v1225_v16  ;;  %885 = vst.msk [vmem:[%s481_s30 + $0x8] sm:$0xf] %vm862_vm1, %v1229_v17  ;;  %v1223_v22 = vpack.c.bf16 %v656_v18, %v656_v18  ;;  %v1227_v23 = vpack.c.bf16 %v744_v19, %v744_v19  ;;  %v667_v24 = vadd.f32 %v1264_v20, %v1176_v8 }
 0x271   : > { %v755_v25 = vadd.f32 %v1276_v21, %v1183_v9  ;;  %v658_v26 = vpop.f32.mrf.mxu0  ;;  %v746_v27 = vpop.f32.mrf.mxu1 }
 0x272   : > { %863 = vst.msk [vmem:[%s1988_s7] sm:$0xf] %vm862_vm1, %v1223_v22  ;;  %883 = vst.msk [vmem:[%s481_s30] sm:$0xf] %vm862_vm1, %v1227_v23  ;;  %v1226_v28 = vpack.c.bf16 %v667_v24, %v667_v24  ;;  %v659_v30 = vadd.f32 %v1176_v8, %v658_v26  ;;  %v747_v31 = vadd.f32 %v1183_v9, %v746_v27 }
 0x273   : > { %v1230_v29 = vpack.c.bf16 %v755_v25, %v755_v25 }
 0x274   : > { %866 = vst.msk [vmem:[%s1988_s7 + $0xc] sm:$0xf] %vm862_vm1, %v1226_v28  ;;  %v1224_v32 = vpack.c.bf16 %v659_v30, %v659_v30  ;;  %v1228_v33 = vpack.c.bf16 %v747_v31, %v747_v31 }
 0x275   : > { %886 = vst.msk [vmem:[%s481_s30 + $0xc] sm:$0xf] %vm862_vm1, %v1230_v29 }
 0x276   : > { %864 = vst.msk [vmem:[%s1988_s7 + $0x4] sm:$0xf] %vm862_vm1, %v1224_v32  ;;  %884 = vst.msk [vmem:[%s481_s30 + $0x4] sm:$0xf] %vm862_vm1, %v1228_v33 }
 0x277   : > { %1553 = shalt.err (!%p1550_p13)
}
 0x278   : > { %s1554_s7 = scalar_lea.hbm %s2012_s28, 256  ;;  %s1558_s27 = scalar_lea.hbm %s2198_s29, 1024 }
 0x279   : > { %p1555_p3 = scmp.ne.s32.totalorder %s2012_s28, %s1554_s7  ;;  %p1559_p7 = scmp.lt.s32.totalorder %s2012_s28, %s2198_s29 }
 0x27a   : > { %p1560_p8 = scmp.lt.s32.totalorder %s1558_s27, %s1554_s7 }
 0x27b   : > { %p1556_p10 = pnand %p1555_p3, %p1888_p0 }
 0x27c   : > { %p1561_p1 = por %p1560_p8, %p1559_p7 }
 0x27d   : > { %p1557_p5 = pneg %p1556_p10 }
 0x27f   : > { %p1562_p9 = pnand %p1561_p1, %p1557_p5 }
 0x281   : > { %1565 = shalt.err (!%p1562_p9)
}
 0x282   : > { %s1711_s9 = smov 64   ;;  %s1712_s15 = smov 4  }
 0x283   : > { %1304 = dma.vmem_to_hbm [thread:$0]  (%p1888_p0), %s2000_s20, 256, %s2012_s28, %s2023_s4, %s1711_s9, %s1711_s9, %s1712_s15  }
 0x284   : > { %s908_s26 = scalar_lea.sflag [#allocation4], %s1925_s10  ;;  %s1566_s25 = scalar_lea.vmem %s1998_s22, 256 }
 0x285   : > { %p1567_p12 = scmp.ne.s32.totalorder %s1998_s22, %s1566_s25  ;;  %s1713_s7 = smov [#allocation10]  }
 0x286   : > { %s1570_s30 = sshll.u32 %s1713_s7, 4  ;;  %s1571_s30 = int_to_ptr.vmem [resolvable:$false] %s1570_s30 }
 0x287   : > { %p1568_p2 = pnand %p1567_p12, %p1888_p0  ;;  %s1572_s21 = scalar_lea.vmem %s1571_s30, 512 }
 0x288   : > { %p1573_p6 = scmp.lt.s32.totalorder %s1998_s22, %s1571_s30  ;;  %p1574_p11 = scmp.lt.s32.totalorder %s1572_s21, %s1566_s25 }
 0x289   : > { %p1569_p4 = pneg %p1568_p2 }
 0x28a   : > { %p1575_p13 = por %p1574_p11, %p1573_p6 }
 0x28c   : > { %p1576_p3 = pnand %p1575_p13, %p1569_p4 }
 0x28e   : > { %1579 = shalt.err (!%p1576_p3)
}
 0x28f   : > { %s1580_s20 = scalar_lea.hbm %s2018_s17, 256  ;;  %s1584_s27 = scalar_lea.hbm %s2199_s16, 1024 }
 0x290   : > { %p1581_p10 = scmp.ne.s32.totalorder %s2018_s17, %s1580_s20  ;;  %p1585_p8 = scmp.lt.s32.totalorder %s2018_s17, %s2199_s16 }
 0x291   : > { %p1586_p1 = scmp.lt.s32.totalorder %s1584_s27, %s1580_s20 }
 0x292   : > { %p1582_p5 = pnand %p1581_p10, %p1888_p0 }
 0x293   : > { %p1587_p9 = por %p1586_p1, %p1585_p8 }
 0x294   : > { %p1583_p7 = pneg %p1582_p5 }
 0x296   : > { %p1588_p12 = pnand %p1587_p9, %p1583_p7 }
 0x298   : > { %1591 = shalt.err (!%p1588_p12)
}
 0x299   : > { %1303 = dma.vmem_to_hbm [thread:$0]  (%p1888_p0), %s1998_s22, 256, %s2018_s17, %s908_s26, %s1711_s9, %s1711_s9, %s1712_s15   ;;  %v1287_v35 = vpop.f32.mrf.mxu0 }
 0x29a   : > { %s2200_s30 = sld [smem:[#allocation28_spill]]  ;;  %s488_s21 = scalar_lea.vmem [#allocation13], %s1983_s3 }
 0x29b   : > { %v831_v37 = vpop.f32.mrf.mxu0  ;;  %s969_s20 = sshll.u32 %s488_s21, 4  ;;  %s2201_s17 = sld [smem:[#allocation31_spill]]  ;;  %s2079_s20 = int_to_ptr.vmem [resolvable:$true] %s969_s20 }
 0x29c   : > { %s1592_s28 = scalar_lea.vmem %s2079_s20, 256  ;;  %s1714_s27 = smov [#allocation13]  }
 0x29d   : > { %v1288_v40 = vpop.f32.mrf.mxu0  ;;  %p1593_p2 = scmp.ne.s32.totalorder %s2079_s20, %s1592_s28  ;;  %s1596_s11 = sshll.u32 %s1714_s27, 4  ;;  %s1597_s11 = int_to_ptr.vmem [resolvable:$false] %s1596_s11 }
 0x29e   : > { %s1598_s12 = scalar_lea.vmem %s1597_s11, 512  ;;  %p1599_p11 = scmp.lt.s32.totalorder %s2079_s20, %s1597_s11 }
 0x29f   : > { %v834_v43 = vpop.f32.mrf.mxu0  ;;  %p1594_p4 = pnand %p1593_p2, %p1888_p0  ;;  %p1600_p13 = scmp.lt.s32.totalorder %s1598_s12, %s1592_s28 }
 0x2a0   : > { %v1190_v34 = vld [vmem:[%s2200_s30] ss:$0 sm:$0xff] }
 0x2a1   : > { %v840_v36 = vadd.f32 %v1287_v35, %v1190_v34  ;;  %v832_v39 = vadd.f32 %v1190_v34, %v831_v37  ;;  %v843_v42 = vadd.f32 %v1288_v40, %v1190_v34  ;;  %v835_v45 = vadd.f32 %v1190_v34, %v834_v43  ;;  %s2202_s26 = smov %s2201_s17  ;;  %s2086_s10 = scalar_lea.hbm %s2201_s17, %s1996_s14 }
 0x2a2   : > { %p1595_p6 = pneg %p1594_p4  ;;  %p1601_p3 = por %p1600_p13, %p1599_p11 }
 0x2a3   : > { %v1233_v38 = vpack.c.bf16 %v840_v36, %v840_v36  ;;  %v1231_v41 = vpack.c.bf16 %v832_v39, %v832_v39  ;;  %v1234_v44 = vpack.c.bf16 %v843_v42, %v843_v42  ;;  %v1232_v46 = vpack.c.bf16 %v835_v45, %v835_v45 }
 0x2a4   : > { %p1602_p10 = pnand %p1601_p3, %p1595_p6 }
 0x2a5   : > { %905 = vst.msk [vmem:[%s488_s21 + $0x8] sm:$0xf] %vm862_vm1, %v1233_v38  ;;  %903 = vst.msk [vmem:[%s488_s21] sm:$0xf] %vm862_vm1, %v1231_v41 }
 0x2a6   : > { %906 = vst.msk [vmem:[%s488_s21 + $0xc] sm:$0xf] %vm862_vm1, %v1234_v44  ;;  %904 = vst.msk [vmem:[%s488_s21 + $0x4] sm:$0xf] %vm862_vm1, %v1232_v46 }
 0x2a7   : > { %1605 = shalt.err (!%p1602_p10)
}
 0x2a8   : > { %s1606_s14 = scalar_lea.hbm %s2086_s10, 256  ;;  %s1610_s30 = scalar_lea.hbm %s2202_s26, 1024 }
 0x2a9   : > { %p1607_p5 = scmp.ne.s32.totalorder %s2086_s10, %s1606_s14  ;;  %p1611_p1 = scmp.lt.s32.totalorder %s2086_s10, %s2202_s26 }
 0x2aa   : > { %p1612_p9 = scmp.lt.s32.totalorder %s1610_s30, %s1606_s14 }
 0x2ab   : > { %p1608_p7 = pnand %p1607_p5, %p1888_p0 }
 0x2ac   : > { %p1613_p12 = por %p1612_p9, %p1611_p1 }
 0x2ad   : > { %p1609_p8 = pneg %p1608_p7 }
 0x2af   : > { %p1614_p2 = pnand %p1613_p12, %p1609_p8 }
 0x2b1   : > { %1617 = shalt.err (!%p1614_p2)
}
 0x2b2   : > { %1305 = dma.vmem_to_hbm [thread:$0]  (%p1888_p0), %s2079_s20, 256, %s2086_s10, %s2023_s4, %s1711_s9, %s1711_s9, %s1712_s15  }
 0x2b3 PF: > { %s2203_s22 = sld [smem:[#allocation19_spill]]  ;;  %p1340_p4 = scmp.ge.s32.totalorder %s1700_s24, 2 }
 0x2b4   : > { %s2204_s17 = sld [smem:[#allocation21_spill]] }
 0x2b9   : > { %s984_s28 = sand.u32 1, %s2203_s22  }
 0x2ba   : > { %p2205_p6 = scmp.ne.s32.totalorder %s2204_s17, 0  ;;  %s985_s27 = scalar_lea.sflag [#allocation4], %s984_s28 }
 0x2bc   : > { %p1324_p11 = pnand %p1340_p4, %p2205_p6 }
 0x2be   : > { %p1325_p13 = pneg %p1324_p11 }
 0x2c0   : > { %1663 = dma.done.wait (%p1325_p13), %s985_s27, 256  }
 0x2c1   : > { %1665 = vsyncadd (%p1325_p13), %s985_s27, 4294967040  ;;  %s2206_s5 = sadd.s32 4294967294, %s1700_s24  }
 0x2c2   : > { %s993_s11 = sand.u32 1, %s2206_s5  }
 0x2c3   : > { %s994_s12 = scalar_lea.sflag [#allocation12], %s993_s11 }
 0x2c4   : > { %1667 = dma.done.wait (%p1325_p13), %s994_s12, 512  }
 0x2c5   : > { %1669 = vsyncadd (%p1325_p13), %s994_s12, 4294966784  ;;  %s33_s24 = sadd.s32 1, %s1700_s24   ;;  %s2207_s20 = sld [smem:[#allocation20_spill]] }
 0x2c6   : > { %p30_p0 = scmp.ge.s32.totalorder %s33_s24, 6   ;;  %s2208_s22 = sld [smem:[#allocation22_spill]] }
 0x2c7   : > { %s2209_s17 = smov %s1676_s18  ;;  %s2210_s18 = smov %s1680_s19 }
 0x2c8   : > { %s2211_s19 = smov %s1905_s8  ;;  %s2212_s21 = smov %s1696_s23 }
 0x2c9   : > { %s2213_s23 = smov %s2219_s13  ;;  %32 = sbr.rel (!%p30_p0) target bundleno = 20 (0x14), region = 145 }
 0x2ce   :  { %1008 = vsyncpa [#allocation3], 1 }
 0x2cf   :  { %1010 = vsyncpa [#allocation3 + $0x1], 1 }
 0x2d0   :  { %1011 = vsyncpa [#allocation6], 1 }
 0x2d1   :  { %1012 = vsyncpa [#allocation9], 1 }
 0x2d2   :  { %1013 = vsyncpa [#allocation4], 1 }
 0x2d3   :  { %1015 = vsyncpa [#allocation4 + $0x1], 1 }
 0x2d4   :  { %1016 = vsyncpa [#allocation12], 1 }
 0x2d5   :  { %1018 = vsyncpa [#allocation12 + $0x1], 1 }

</bundles_post_ra>
